<compile_context>
chip_gen: v7x
topology: tpu7x:2x2x1
jax: 0.10.0
libtpu: 0.0.40
codegen_flags: <defaults>
</compile_context>

<pallas_src>
import functools
import math
from collections import namedtuple

import jax
import jax.numpy as jnp
from jax.experimental import pallas as pl
from jax.experimental.pallas import tpu as pltpu

_fields = ('sdf', 'latent', 'rgb', 'occupancy')
Result = namedtuple('Result', _fields, defaults=(None,) * len(_fields))


def _validate_out_dims(out_dims):
    for k, v in out_dims.items():
        if k not in _fields:
            raise ValueError(f'invalid out_dims key {k} (valid: {_fields})')
        if k in ('sdf', 'occupancy'):
            assert v == 1
        elif k == 'rgb':
            assert v == 3


def _round_up(a, b):
    return ((a + b - 1) // b) * b


def _fold_weight_norm(v, g):
    # nn.utils.weight_norm on Linear (dim=0): W[i, :] = g[i] * v[i, :] / ||v[i, :]||
    norm = jnp.sqrt(jnp.sum(v * v, axis=1, keepdims=True))
    return v * (g.reshape(-1, 1) / norm)


# --------------------------------------------------------------------------- #
# Pallas kernel: fused (Linear -> ReLU)* -> Linear -> tanh -> scale/shift.
# --------------------------------------------------------------------------- #
def _fused_mlp_kernel(x_ref, scale_ref, shift_ref, *refs, n_layers):
    # refs = (w0, b0, w1, b1, ..., w_{L-1}, b_{L-1}, o_ref)
    # weights are pre-transposed to (K, N) in compute_dtype; biases are f32 (1, N).
    o_ref = refs[-1]
    h = x_ref[...]                                   # compute_dtype (bf16 default)
    for l in range(n_layers):
        w = refs[2 * l][...]
        b = refs[2 * l + 1][...]                     # f32
        lhs = h if h.dtype == w.dtype else h.astype(w.dtype)   # bf16 MXU inputs
        h = jnp.dot(lhs, w, preferred_element_type=jnp.float32) + b   # f32 accum
        if l < n_layers - 1:
            h = jnp.maximum(h, 0.0)                  # f32 ReLU (VPU)
    y = jnp.tanh(h)                                  # f32 tanh (EUP)
    # fused _parse_output(scale_rgb=True): rgb lanes get y*0.5+0.5, others y*1+0
    y = y * scale_ref[...] + shift_ref[...]
    o_ref[...] = y.astype(o_ref.dtype)


def _vmem_bytes_estimate(tm, d0p, widths_p, in_bytes, out_bytes, weight_bufs):
    b = 2 * tm * d0p * in_bytes                      # double-buffered x tile
    b += 2 * tm * widths_p[-1] * out_bytes           # double-buffered out tile
    prev = d0p
    for n in widths_p:
        # weights (weight_bufs copies) + biases ((1,N) pads to 8 sublanes, f32)
        b += weight_bufs * (prev * n * in_bytes + 8 * n * 4)
        prev = n
    b += 2 * tm * max(widths_p) * 4                  # two live f32 intermediates
    b += 2 * weight_bufs * 8 * widths_p[-1] * 4      # scale / shift rows
    return b


def _choose_row_tile(M, tm_req, sub, gran=256):
    """Pick a row tile: sublane-aligned, prefers multiples of `gran`, and keeps
    at least 2 grid steps when M permits (so v7x's 2 TensorCores both work)."""
    tm_req = max(sub, int(tm_req))
    if M <= sub:
        return sub
    if M >= 2 * sub:
        cap = _round_up(-(-M // 2), sub)             # ceil(M/2) -> >=2 tiles
    else:
        cap = _round_up(M, sub)
    tm_eff = min(_round_up(tm_req, sub), cap)
    if tm_eff >= gran:
        tm_eff = (tm_eff // gran) * gran             # lane/MXU friendly multiple
    return max(sub, tm_eff)


# --------------------------------------------------------------------------- #
# Wrapper: full RenderingNetwork.forward
# --------------------------------------------------------------------------- #
def rendering_network_forward(x, c, params, out_dims, *, tm=1024,
                              compute_dtype=jnp.bfloat16):
    """params: list of (v, g, b) per linear layer (weight_norm parametrization)."""
    _validate_out_dims(out_dims)

    # ---- parameter-side prep (tiny; plain XLA ops) -------------------------
    weights = [_fold_weight_norm(v, g) for (v, g, _) in params]
    biases = [b for (_, _, b) in params]

    if c is not None and c.size > 0:
        assert x.ndim == c.ndim
        x = jnp.concatenate([c, x], axis=-1)

    lead = x.shape[:-1]
    d0 = x.shape[-1]
    assert d0 == weights[0].shape[1], 'input feature dim must match lin0 fan_in'
    out_dim = weights[-1].shape[0]
    assert sum(out_dims.values()) == out_dim, \
        'out_dims channel order/total must match the final linear layer'

    x2 = x.reshape(-1, d0).astype(jnp.float32)
    M = x2.shape[0]

    in_bytes = jnp.dtype(compute_dtype).itemsize
    sub32 = in_bytes < 4
    out_dtype = jnp.bfloat16 if sub32 else jnp.float32
    out_bytes = jnp.dtype(out_dtype).itemsize

    # ---- lane-dense padding: every feature dim -> multiple of 128 ----------
    d0p = _round_up(d0, 128)
    widths = [w.shape[0] for w in weights]
    widths_p = [_round_up(n, 128) for n in widths]
    n_out_p = widths_p[-1]

    x_p = jnp.pad(x2, ((0, 0), (0, d0p - d0))).astype(compute_dtype)
    wts_p, bs_p = [], []
    kp, k = d0p, d0
    for w, b, n_p, n in zip(weights, biases, widths_p, widths):
        wts_p.append(jnp.pad(w.T, ((0, kp - k), (0, n_p - n))).astype(compute_dtype))
        bs_p.append(jnp.pad(b.reshape(1, -1),
                            ((0, 0), (0, n_p - n))).astype(jnp.float32))
        kp, k = n_p, n

    # fused tail scaling: rgb lanes -> (tanh+1)/2, everything else -> tanh
    scale = jnp.ones((1, n_out_p), jnp.float32)
    shift = jnp.zeros((1, n_out_p), jnp.float32)
    off = 0
    for f, s in out_dims.items():
        if f == 'rgb':
            scale = scale.at[0, off:off + s].set(0.5)
            shift = shift.at[0, off:off + s].set(0.5)
        off += s

    # ---- row tiling: sublane-safe (16 for bf16), >=2 tiles when possible ----
    sub = 16 if sub32 else 8
    tm_eff = _choose_row_tile(M, tm, sub)
    num_tiles = -(-M // tm_eff)
    Mp = num_tiles * tm_eff
    if Mp != M:
        x_p = jnp.pad(x_p, ((0, Mp - M), (0, 0)))

    L = len(wts_p)
    flat_params = [a for pair in zip(wts_p, bs_p) for a in pair]

    # ---- VMEM budget: derive from hardware, leave headroom (v7x has 64 MiB) -
    try:
        phys_vmem = int(pltpu.get_tpu_info().vmem_capacity_bytes)
    except Exception:
        phys_vmem = 64 * 1024 * 1024
    vmem_cap = int(phys_vmem * 0.75)

    ks = [d0p] + widths_p[:-1]
    cost = pl.CostEstimate(
        flops=int(2 * Mp * sum(k_ * n_ for k_, n_ in zip(ks, widths_p))),
        transcendentals=int(Mp * n_out_p),
        bytes_accessed=int(
            Mp * d0p * in_bytes + Mp * n_out_p * out_bytes
            + sum(w.size * in_bytes + b.size * 4
                  for w, b in zip(wts_p, bs_p))),
    )

    kernel = functools.partial(_fused_mlp_kernel, n_layers=L)

    def _const_spec(shape, single_buffer):
        # constant index_map -> parameters are resident; single-buffer them when
        # supported to halve their VMEM footprint.
        if single_buffer:
            try:
                return pl.BlockSpec(shape, lambda i: (0, 0),
                                    pipeline_mode=pl.Buffered(1))
            except TypeError:
                pass
        return pl.BlockSpec(shape, lambda i: (0, 0))

    def _run(single_buffer):
        in_specs = [pl.BlockSpec((tm_eff, d0p), lambda i: (i, 0)),
                    _const_spec(scale.shape, single_buffer),
                    _const_spec(shift.shape, single_buffer)]
        for wt, bp in zip(wts_p, bs_p):
            in_specs.append(_const_spec(wt.shape, single_buffer))
            in_specs.append(_const_spec(bp.shape, single_buffer))

        vmem_est = _vmem_bytes_estimate(tm_eff, d0p, widths_p, in_bytes,
                                        out_bytes, 1 if single_buffer else 2)
        vmem_limit = int(min(vmem_cap, max(32 * 1024 * 1024, 2 * vmem_est)))

        out = pl.pallas_call(
            kernel,
            out_shape=jax.ShapeDtypeStruct((Mp, n_out_p), out_dtype),
            grid_spec=pltpu.PrefetchScalarGridSpec(
                num_scalar_prefetch=0,
                grid=(Mp // tm_eff,),
                in_specs=in_specs,
                out_specs=pl.BlockSpec((tm_eff, n_out_p), lambda i: (i, 0)),
            ),
            compiler_params=pltpu.CompilerParams(
                dimension_semantics=("parallel",),
                vmem_limit_bytes=vmem_limit,
            ),
            cost_estimate=cost,
        )(x_p, scale, shift, *flat_params)
        return jax.block_until_ready(out)

    try:
        out = _run(single_buffer=True)
    except Exception:
        # Fallback if this JAX build rejects Buffered(1) for resident blocks.
        out = _run(single_buffer=False)

    y = out[:M, :out_dim].astype(jnp.float32).reshape(*lead, out_dim)

    # ---- _parse_output: rgb scaling was fused in the kernel; just split ----
    parts = {}
    off = 0
    for f, s in out_dims.items():
        parts[f] = y[..., off:off + s]
        off += s
    return Result(**parts)


# --------------------------------------------------------------------------- #
# Parameter init matching RenderingNetwork.__init__ (weight_norm=True)
# --------------------------------------------------------------------------- #
def init_rendering_network_params(key, dim=9, out_dims=None, c_dim=256,
                                  hidden_size=512, n_layers=4,
                                  num_frequencies=4):
    if out_dims is None:
        out_dims = dict(rgb=3)
    _validate_out_dims(out_dims)
    out_dim = sum(out_dims.values())
    dims = [dim + c_dim] + [hidden_size] * n_layers + [out_dim]
    if num_frequencies > 0:
        input_ch = 3 + 3 * 2 * num_frequencies   # Embedder.out_dim (include_input)
        dims[0] += input_ch - 3
    params = []
    for l in range(len(dims) - 1):
        fan_in, fan_out = dims[l], dims[l + 1]
        key, kw, kb = jax.random.split(key, 3)
        bound = 1.0 / math.sqrt(fan_in)           # default nn.Linear init bounds
        v = jax.random.uniform(kw, (fan_out, fan_in), jnp.float32, -bound, bound)
        b = jax.random.uniform(kb, (fan_out,), jnp.float32, -bound, bound)
        g = jnp.sqrt(jnp.sum(v * v, axis=1))      # weight_norm init: g = ||v||
        params.append((v, g, b))
    return params, dims


def _reference_forward(x, c, params, out_dims):
    weights = [_fold_weight_norm(v, g) for (v, g, _) in params]
    biases = [b for (_, _, b) in params]
    h = jnp.concatenate([c, x], axis=-1) if c is not None else x
    n = len(weights)
    for l, (w, b) in enumerate(zip(weights, biases)):
        h = jnp.dot(h, w.T, precision=jax.lax.Precision.HIGHEST) + b
        if l < n - 1:
            h = jnp.maximum(h, 0.0)
    h = jnp.tanh(h)
    parts, off = {}, 0
    for f, s in out_dims.items():
        parts[f] = h[..., off:off + s]
        off += s
    if 'rgb' in parts:
        parts['rgb'] = (parts['rgb'] + 1.0) / 2.0
    return Result(**parts)


if __name__ == "__main__":
    key = jax.random.PRNGKey(0)
    k_p, k_x, k_c = jax.random.split(key, 3)

    # Small but structurally faithful config.
    dim, c_dim, hidden_size, n_layers, num_frequencies = 9, 32, 128, 2, 4
    out_dims = dict(rgb=3)

    params, dims = init_rendering_network_params(
        k_p, dim=dim, out_dims=out_dims, c_dim=c_dim,
        hidden_size=hidden_size, n_layers=n_layers,
        num_frequencies=num_frequencies)

    # forward() expects cat([c, x]).shape[-1] == dims[0]
    batch, n_pts = 2, 256
    x_feat = dims[0] - c_dim                 # = dim + (embedder out_dim - 3) = 33
    x = jax.random.normal(k_x, (batch, n_pts, x_feat), dtype=jnp.float32)
    c = jax.random.normal(k_c, (batch, n_pts, c_dim), dtype=jnp.float32)

    ref = _reference_forward(x, c, params, out_dims)

    # bf16 MXU path (default): f32 accumulation, looser tolerance.
    res_bf16 = rendering_network_forward(x, c, params, out_dims,
                                         tm=1024, compute_dtype=jnp.bfloat16)
    rgb_bf16 = jax.block_until_ready(res_bf16.rgb)
    assert rgb_bf16.shape == (batch, n_pts, sum(out_dims.values()))
    assert jnp.allclose(rgb_bf16, ref.rgb, atol=3e-2, rtol=3e-2)

    # f32 path: tight tolerance sanity check of the kernel structure.
    res_f32 = rendering_network_forward(x, c, params, out_dims,
                                        tm=512, compute_dtype=jnp.float32)
    rgb_f32 = jax.block_until_ready(res_f32.rgb)
    assert jnp.allclose(rgb_f32, ref.rgb, atol=1e-4, rtol=1e-4)

    print("KERNEL_OK")
</pallas_src>

<mosaic_0001>
module attributes {stable_mosaic.version = 11 : i64} {
  func.func @_fused_mlp_kernel(%arg0: i32, %arg1: memref<256x128xbf16, #tpu.memory_space<vmem>>, %arg2: memref<1x128xf32, #tpu.memory_space<vmem>>, %arg3: memref<1x128xf32, #tpu.memory_space<vmem>>, %arg4: memref<128x128xbf16, #tpu.memory_space<vmem>>, %arg5: memref<1x128xf32, #tpu.memory_space<vmem>>, %arg6: memref<128x128xbf16, #tpu.memory_space<vmem>>, %arg7: memref<1x128xf32, #tpu.memory_space<vmem>>, %arg8: memref<128x128xbf16, #tpu.memory_space<vmem>>, %arg9: memref<1x128xf32, #tpu.memory_space<vmem>>, %arg10: memref<256x128xbf16, #tpu.memory_space<vmem>>) attributes {dimension_semantics = [#tpu.dimension_semantics<parallel>], iteration_bounds = array<i64: 2>, scalar_prefetch = 0 : i64, scratch_operands = 0 : i64, tpu.core_type = #tpu.core_type<tc>, window_params = [{transform_indices = @transform_0, window_bounds = array<i64: 256, 128>}, {pipeline_mode = #tpu.pipeline_mode<synchronous>, transform_indices = @transform_1, window_bounds = array<i64: 1, 128>}, {pipeline_mode = #tpu.pipeline_mode<synchronous>, transform_indices = @transform_2, window_bounds = array<i64: 1, 128>}, {pipeline_mode = #tpu.pipeline_mode<synchronous>, transform_indices = @transform_3, window_bounds = array<i64: 128, 128>}, {pipeline_mode = #tpu.pipeline_mode<synchronous>, transform_indices = @transform_4, window_bounds = array<i64: 1, 128>}, {pipeline_mode = #tpu.pipeline_mode<synchronous>, transform_indices = @transform_5, window_bounds = array<i64: 128, 128>}, {pipeline_mode = #tpu.pipeline_mode<synchronous>, transform_indices = @transform_6, window_bounds = array<i64: 1, 128>}, {pipeline_mode = #tpu.pipeline_mode<synchronous>, transform_indices = @transform_7, window_bounds = array<i64: 128, 128>}, {pipeline_mode = #tpu.pipeline_mode<synchronous>, transform_indices = @transform_8, window_bounds = array<i64: 1, 128>}, {transform_indices = @transform_9, window_bounds = array<i64: 256, 128>}]} {
    %c0 = arith.constant 0 : index
    %c0_0 = arith.constant 0 : index
    %0 = vector.load %arg1[%c0, %c0_0] : memref<256x128xbf16, #tpu.memory_space<vmem>>, vector<256x128xbf16>
    %c0_1 = arith.constant 0 : index
    %c0_2 = arith.constant 0 : index
    %1 = vector.load %arg4[%c0_1, %c0_2] : memref<128x128xbf16, #tpu.memory_space<vmem>>, vector<128x128xbf16>
    %c0_3 = arith.constant 0 : index
    %c0_4 = arith.constant 0 : index
    %2 = vector.load %arg5[%c0_3, %c0_4] : memref<1x128xf32, #tpu.memory_space<vmem>>, vector<1x128xf32>
    %cst = arith.constant dense<0.000000e+00> : vector<256x128xf32>
    %3 = tpu.matmul %0, %1, %cst {dimension_numbers = #tpu.dot_dimension_numbers<[1], [0], [0], [1], [0, 0, 1, 1], [], []>} : vector<256x128xbf16>, vector<128x128xbf16>, vector<256x128xf32> -> vector<256x128xf32>
    %4 = vector.broadcast %2 : vector<1x128xf32> to vector<256x128xf32>
    %5 = arith.addf %3, %4 : vector<256x128xf32>
    %cst_5 = arith.constant 0.000000e+00 : f32
    %6 = vector.broadcast %cst_5 : f32 to vector<256x128xf32>
    %7 = arith.maximumf %5, %6 : vector<256x128xf32>
    %c0_6 = arith.constant 0 : index
    %c0_7 = arith.constant 0 : index
    %8 = vector.load %arg6[%c0_6, %c0_7] : memref<128x128xbf16, #tpu.memory_space<vmem>>, vector<128x128xbf16>
    %c0_8 = arith.constant 0 : index
    %c0_9 = arith.constant 0 : index
    %9 = vector.load %arg7[%c0_8, %c0_9] : memref<1x128xf32, #tpu.memory_space<vmem>>, vector<1x128xf32>
    %10 = arith.truncf %7 : vector<256x128xf32> to vector<256x128xbf16>
    %cst_10 = arith.constant dense<0.000000e+00> : vector<256x128xf32>
    %11 = tpu.matmul %10, %8, %cst_10 {dimension_numbers = #tpu.dot_dimension_numbers<[1], [0], [0], [1], [0, 0, 1, 1], [], []>} : vector<256x128xbf16>, vector<128x128xbf16>, vector<256x128xf32> -> vector<256x128xf32>
    %12 = vector.broadcast %9 : vector<1x128xf32> to vector<256x128xf32>
    %13 = arith.addf %11, %12 : vector<256x128xf32>
    %cst_11 = arith.constant 0.000000e+00 : f32
    %14 = vector.broadcast %cst_11 : f32 to vector<256x128xf32>
    %15 = arith.maximumf %13, %14 : vector<256x128xf32>
    %c0_12 = arith.constant 0 : index
    %c0_13 = arith.constant 0 : index
    %16 = vector.load %arg8[%c0_12, %c0_13] : memref<128x128xbf16, #tpu.memory_space<vmem>>, vector<128x128xbf16>
    %c0_14 = arith.constant 0 : index
    %c0_15 = arith.constant 0 : index
    %17 = vector.load %arg9[%c0_14, %c0_15] : memref<1x128xf32, #tpu.memory_space<vmem>>, vector<1x128xf32>
    %18 = arith.truncf %15 : vector<256x128xf32> to vector<256x128xbf16>
    %cst_16 = arith.constant dense<0.000000e+00> : vector<256x128xf32>
    %19 = tpu.matmul %18, %16, %cst_16 {dimension_numbers = #tpu.dot_dimension_numbers<[1], [0], [0], [1], [0, 0, 1, 1], [], []>} : vector<256x128xbf16>, vector<128x128xbf16>, vector<256x128xf32> -> vector<256x128xf32>
    %20 = vector.broadcast %17 : vector<1x128xf32> to vector<256x128xf32>
    %21 = arith.addf %19, %20 : vector<256x128xf32>
    %22 = math.tanh %21 : vector<256x128xf32>
    %c0_17 = arith.constant 0 : index
    %c0_18 = arith.constant 0 : index
    %23 = vector.load %arg2[%c0_17, %c0_18] : memref<1x128xf32, #tpu.memory_space<vmem>>, vector<1x128xf32>
    %24 = vector.broadcast %23 : vector<1x128xf32> to vector<256x128xf32>
    %25 = arith.mulf %22, %24 : vector<256x128xf32>
    %c0_19 = arith.constant 0 : index
    %c0_20 = arith.constant 0 : index
    %26 = vector.load %arg3[%c0_19, %c0_20] : memref<1x128xf32, #tpu.memory_space<vmem>>, vector<1x128xf32>
    %27 = vector.broadcast %26 : vector<1x128xf32> to vector<256x128xf32>
    %28 = arith.addf %25, %27 : vector<256x128xf32>
    %29 = arith.truncf %28 : vector<256x128xf32> to vector<256x128xbf16>
    %c0_21 = arith.constant 0 : index
    %c0_22 = arith.constant 0 : index
    %30 = vector.load %arg10[%c0_21, %c0_22] : memref<256x128xbf16, #tpu.memory_space<vmem>>, vector<256x128xbf16>
    tpu.vector_store %arg10[%c0_21, %c0_22], %29 {strides = array<i32>} : memref<256x128xbf16, #tpu.memory_space<vmem>>, vector<256x128xbf16>,
    return
  }
  func.func @transform_0(%arg0: i32) -> (i32, i32) {
    %c0_i32 = arith.constant 0 : i32
    %c0_i32_0 = arith.constant 0 : i32
    return %arg0, %c0_i32 : i32, i32
  }
  func.func @transform_1(%arg0: i32) -> (i32, i32) {
    %c0_i32 = arith.constant 0 : i32
    %c0_i32_0 = arith.constant 0 : i32
    %c0_i32_1 = arith.constant 0 : i32
    return %c0_i32, %c0_i32_0 : i32, i32
  }
  func.func @transform_2(%arg0: i32) -> (i32, i32) {
    %c0_i32 = arith.constant 0 : i32
    %c0_i32_0 = arith.constant 0 : i32
    %c0_i32_1 = arith.constant 0 : i32
    return %c0_i32, %c0_i32_0 : i32, i32
  }
  func.func @transform_3(%arg0: i32) -> (i32, i32) {
    %c0_i32 = arith.constant 0 : i32
    %c0_i32_0 = arith.constant 0 : i32
    %c0_i32_1 = arith.constant 0 : i32
    return %c0_i32, %c0_i32_0 : i32, i32
  }
  func.func @transform_4(%arg0: i32) -> (i32, i32) {
    %c0_i32 = arith.constant 0 : i32
    %c0_i32_0 = arith.constant 0 : i32
    %c0_i32_1 = arith.constant 0 : i32
    return %c0_i32, %c0_i32_0 : i32, i32
  }
  func.func @transform_5(%arg0: i32) -> (i32, i32) {
    %c0_i32 = arith.constant 0 : i32
    %c0_i32_0 = arith.constant 0 : i32
    %c0_i32_1 = arith.constant 0 : i32
    return %c0_i32, %c0_i32_0 : i32, i32
  }
  func.func @transform_6(%arg0: i32) -> (i32, i32) {
    %c0_i32 = arith.constant 0 : i32
    %c0_i32_0 = arith.constant 0 : i32
    %c0_i32_1 = arith.constant 0 : i32
    return %c0_i32, %c0_i32_0 : i32, i32
  }
  func.func @transform_7(%arg0: i32) -> (i32, i32) {
    %c0_i32 = arith.constant 0 : i32
    %c0_i32_0 = arith.constant 0 : i32
    %c0_i32_1 = arith.constant 0 : i32
    return %c0_i32, %c0_i32_0 : i32, i32
  }
  func.func @transform_8(%arg0: i32) -> (i32, i32) {
    %c0_i32 = arith.constant 0 : i32
    %c0_i32_0 = arith.constant 0 : i32
    %c0_i32_1 = arith.constant 0 : i32
    return %c0_i32, %c0_i32_0 : i32, i32
  }
  func.func @transform_9(%arg0: i32) -> (i32, i32) {
    %c0_i32 = arith.constant 0 : i32
    %c0_i32_0 = arith.constant 0 : i32
    return %arg0, %c0_i32 : i32, i32
  }
}

module attributes {stable_mosaic.version = 11 : i64} {
  func.func @_fused_mlp_kernel(%arg0: i32, %arg1: memref<256x128xbf16, #tpu.memory_space<vmem>>, %arg2: memref<1x128xf32, #tpu.memory_space<vmem>>, %arg3: memref<1x128xf32, #tpu.memory_space<vmem>>, %arg4: memref<128x128xbf16, #tpu.memory_space<vmem>>, %arg5: memref<1x128xf32, #tpu.memory_space<vmem>>, %arg6: memref<128x128xbf16, #tpu.memory_space<vmem>>, %arg7: memref<1x128xf32, #tpu.memory_space<vmem>>, %arg8: memref<128x128xbf16, #tpu.memory_space<vmem>>, %arg9: memref<1x128xf32, #tpu.memory_space<vmem>>, %arg10: memref<256x128xbf16, #tpu.memory_space<vmem>>) attributes {dimension_semantics = [#tpu.dimension_semantics<parallel>], iteration_bounds = array<i64: 2>, scalar_prefetch = 0 : i64, scratch_operands = 0 : i64, tpu.core_type = #tpu.core_type<tc>, window_params = [{transform_indices = @transform_0, window_bounds = array<i64: 256, 128>}, {pipeline_mode = #tpu.pipeline_mode<synchronous>, transform_indices = @transform_1, window_bounds = array<i64: 1, 128>}, {pipeline_mode = #tpu.pipeline_mode<synchronous>, transform_indices = @transform_2, window_bounds = array<i64: 1, 128>}, {pipeline_mode = #tpu.pipeline_mode<synchronous>, transform_indices = @transform_3, window_bounds = array<i64: 128, 128>}, {pipeline_mode = #tpu.pipeline_mode<synchronous>, transform_indices = @transform_4, window_bounds = array<i64: 1, 128>}, {pipeline_mode = #tpu.pipeline_mode<synchronous>, transform_indices = @transform_5, window_bounds = array<i64: 128, 128>}, {pipeline_mode = #tpu.pipeline_mode<synchronous>, transform_indices = @transform_6, window_bounds = array<i64: 1, 128>}, {pipeline_mode = #tpu.pipeline_mode<synchronous>, transform_indices = @transform_7, window_bounds = array<i64: 128, 128>}, {pipeline_mode = #tpu.pipeline_mode<synchronous>, transform_indices = @transform_8, window_bounds = array<i64: 1, 128>}, {transform_indices = @transform_9, window_bounds = array<i64: 256, 128>}]} {
    %c0 = arith.constant 0 : index
    %c0_0 = arith.constant 0 : index
    %0 = vector.load %arg1[%c0, %c0_0] : memref<256x128xbf16, #tpu.memory_space<vmem>>, vector<256x128xbf16>
    %c0_1 = arith.constant 0 : index
    %c0_2 = arith.constant 0 : index
    %1 = vector.load %arg4[%c0_1, %c0_2] : memref<128x128xbf16, #tpu.memory_space<vmem>>, vector<128x128xbf16>
    %c0_3 = arith.constant 0 : index
    %c0_4 = arith.constant 0 : index
    %2 = vector.load %arg5[%c0_3, %c0_4] : memref<1x128xf32, #tpu.memory_space<vmem>>, vector<1x128xf32>
    %cst = arith.constant dense<0.000000e+00> : vector<256x128xf32>
    %3 = tpu.matmul %0, %1, %cst {dimension_numbers = #tpu.dot_dimension_numbers<[1], [0], [0], [1], [0, 0, 1, 1], [], []>} : vector<256x128xbf16>, vector<128x128xbf16>, vector<256x128xf32> -> vector<256x128xf32>
    %4 = vector.broadcast %2 : vector<1x128xf32> to vector<256x128xf32>
    %5 = arith.addf %3, %4 : vector<256x128xf32>
    %cst_5 = arith.constant 0.000000e+00 : f32
    %6 = vector.broadcast %cst_5 : f32 to vector<256x128xf32>
    %7 = arith.maximumf %5, %6 : vector<256x128xf32>
    %c0_6 = arith.constant 0 : index
    %c0_7 = arith.constant 0 : index
    %8 = vector.load %arg6[%c0_6, %c0_7] : memref<128x128xbf16, #tpu.memory_space<vmem>>, vector<128x128xbf16>
    %c0_8 = arith.constant 0 : index
    %c0_9 = arith.constant 0 : index
    %9 = vector.load %arg7[%c0_8, %c0_9] : memref<1x128xf32, #tpu.memory_space<vmem>>, vector<1x128xf32>
    %10 = arith.truncf %7 : vector<256x128xf32> to vector<256x128xbf16>
    %cst_10 = arith.constant dense<0.000000e+00> : vector<256x128xf32>
    %11 = tpu.matmul %10, %8, %cst_10 {dimension_numbers = #tpu.dot_dimension_numbers<[1], [0], [0], [1], [0, 0, 1, 1], [], []>} : vector<256x128xbf16>, vector<128x128xbf16>, vector<256x128xf32> -> vector<256x128xf32>
    %12 = vector.broadcast %9 : vector<1x128xf32> to vector<256x128xf32>
    %13 = arith.addf %11, %12 : vector<256x128xf32>
    %cst_11 = arith.constant 0.000000e+00 : f32
    %14 = vector.broadcast %cst_11 : f32 to vector<256x128xf32>
    %15 = arith.maximumf %13, %14 : vector<256x128xf32>
    %c0_12 = arith.constant 0 : index
    %c0_13 = arith.constant 0 : index
    %16 = vector.load %arg8[%c0_12, %c0_13] : memref<128x128xbf16, #tpu.memory_space<vmem>>, vector<128x128xbf16>
    %c0_14 = arith.constant 0 : index
    %c0_15 = arith.constant 0 : index
    %17 = vector.load %arg9[%c0_14, %c0_15] : memref<1x128xf32, #tpu.memory_space<vmem>>, vector<1x128xf32>
    %18 = arith.truncf %15 : vector<256x128xf32> to vector<256x128xbf16>
    %cst_16 = arith.constant dense<0.000000e+00> : vector<256x128xf32>
    %19 = tpu.matmul %18, %16, %cst_16 {dimension_numbers = #tpu.dot_dimension_numbers<[1], [0], [0], [1], [0, 0, 1, 1], [], []>} : vector<256x128xbf16>, vector<128x128xbf16>, vector<256x128xf32> -> vector<256x128xf32>
    %20 = vector.broadcast %17 : vector<1x128xf32> to vector<256x128xf32>
    %21 = arith.addf %19, %20 : vector<256x128xf32>
    %22 = math.tanh %21 : vector<256x128xf32>
    %c0_17 = arith.constant 0 : index
    %c0_18 = arith.constant 0 : index
    %23 = vector.load %arg2[%c0_17, %c0_18] : memref<1x128xf32, #tpu.memory_space<vmem>>, vector<1x128xf32>
    %24 = vector.broadcast %23 : vector<1x128xf32> to vector<256x128xf32>
    %25 = arith.mulf %22, %24 : vector<256x128xf32>
    %c0_19 = arith.constant 0 : index
    %c0_20 = arith.constant 0 : index
    %26 = vector.load %arg3[%c0_19, %c0_20] : memref<1x128xf32, #tpu.memory_space<vmem>>, vector<1x128xf32>
    %27 = vector.broadcast %26 : vector<1x128xf32> to vector<256x128xf32>
    %28 = arith.addf %25, %27 : vector<256x128xf32>
    %29 = arith.truncf %28 : vector<256x128xf32> to vector<256x128xbf16>
    %c0_21 = arith.constant 0 : index
    %c0_22 = arith.constant 0 : index
    %30 = vector.load %arg10[%c0_21, %c0_22] : memref<256x128xbf16, #tpu.memory_space<vmem>>, vector<256x128xbf16>
    tpu.vector_store %arg10[%c0_21, %c0_22], %29 {strides = array<i32>} : memref<256x128xbf16, #tpu.memory_space<vmem>>, vector<256x128xbf16>,
    return
  }
  func.func @transform_0(%arg0: i32) -> (i32, i32) {
    %c0_i32 = arith.constant 0 : i32
    %c0_i32_0 = arith.constant 0 : i32
    return %arg0, %c0_i32 : i32, i32
  }
  func.func @transform_1(%arg0: i32) -> (i32, i32) {
    %c0_i32 = arith.constant 0 : i32
    %c0_i32_0 = arith.constant 0 : i32
    %c0_i32_1 = arith.constant 0 : i32
    return %c0_i32, %c0_i32_0 : i32, i32
  }
  func.func @transform_2(%arg0: i32) -> (i32, i32) {
    %c0_i32 = arith.constant 0 : i32
    %c0_i32_0 = arith.constant 0 : i32
    %c0_i32_1 = arith.constant 0 : i32
    return %c0_i32, %c0_i32_0 : i32, i32
  }
  func.func @transform_3(%arg0: i32) -> (i32, i32) {
    %c0_i32 = arith.constant 0 : i32
    %c0_i32_0 = arith.constant 0 : i32
    %c0_i32_1 = arith.constant 0 : i32
    return %c0_i32, %c0_i32_0 : i32, i32
  }
  func.func @transform_4(%arg0: i32) -> (i32, i32) {
    %c0_i32 = arith.constant 0 : i32
    %c0_i32_0 = arith.constant 0 : i32
    %c0_i32_1 = arith.constant 0 : i32
    return %c0_i32, %c0_i32_0 : i32, i32
  }
  func.func @transform_5(%arg0: i32) -> (i32, i32) {
    %c0_i32 = arith.constant 0 : i32
    %c0_i32_0 = arith.constant 0 : i32
    %c0_i32_1 = arith.constant 0 : i32
    return %c0_i32, %c0_i32_0 : i32, i32
  }
  func.func @transform_6(%arg0: i32) -> (i32, i32) {
    %c0_i32 = arith.constant 0 : i32
    %c0_i32_0 = arith.constant 0 : i32
    %c0_i32_1 = arith.constant 0 : i32
    return %c0_i32, %c0_i32_0 : i32, i32
  }
  func.func @transform_7(%arg0: i32) -> (i32, i32) {
    %c0_i32 = arith.constant 0 : i32
    %c0_i32_0 = arith.constant 0 : i32
    %c0_i32_1 = arith.constant 0 : i32
    return %c0_i32, %c0_i32_0 : i32, i32
  }
  func.func @transform_8(%arg0: i32) -> (i32, i32) {
    %c0_i32 = arith.constant 0 : i32
    %c0_i32_0 = arith.constant 0 : i32
    %c0_i32_1 = arith.constant 0 : i32
    return %c0_i32, %c0_i32_0 : i32, i32
  }
  func.func @transform_9(%arg0: i32) -> (i32, i32) {
    %c0_i32 = arith.constant 0 : i32
    %c0_i32_0 = arith.constant 0 : i32
    return %arg0, %c0_i32 : i32, i32
  }
}

</mosaic_0001>

<bundles_post_ra>
// kernel: tpu_custom_call.1
= control target key start
LH: loop header
LB: loop body
LE: loop exit
PB: predicated region body
PF: predicated region fallthrough
CT: control target
= control target key end

     0   :  { %s3105_s0 = inlined_call_operand.hbm [shape: bf16[512,128], index: 0, kind: input, shape index: {}]   ;;  %s3106_s1 = inlined_call_operand.vmem [shape: f32[1,128], index: 1, kind: input, shape index: {}]   ;;  %s3107_s2 = inlined_call_operand.vmem [shape: f32[1,128], index: 2, kind: input, shape index: {}]   ;;  %s3108_s3 = inlined_call_operand.hbm [shape: bf16[128,128], index: 3, kind: input, shape index: {}]   ;;  %s3109_s4 = inlined_call_operand.vmem [shape: f32[1,128], index: 4, kind: input, shape index: {}]   ;;  %s3110_s5 = inlined_call_operand.hbm [shape: bf16[128,128], index: 5, kind: input, shape index: {}]   ;;  %s3111_s6 = inlined_call_operand.vmem [shape: f32[1,128], index: 6, kind: input, shape index: {}]   ;;  %s3112_s7 = inlined_call_operand.hbm [shape: bf16[128,128], index: 7, kind: input, shape index: {}]   ;;  %s3113_s8 = inlined_call_operand.vmem [shape: f32[1,128], index: 8, kind: input, shape index: {}]   ;;  %s3114_s9 = inlined_call_operand.hbm [shape: bf16[512,128], index: 9, kind: output, shape index: {}]  }
   0x1   :  { %3121 = sst [smem:[#allocation17_spill]] %s3114_s9 }
   0x2   :  { %14 = vsyncpa [#allocation3], 0 }
   0x3   :  { %16 = vsyncpa [#allocation3 + $0x1], 0 }
   0x4   :  { %17 = vsyncpa [#allocation6], 0 }
   0x5   :  { %18 = vsyncpa [#allocation9], 0 }
   0x6   :  { %19 = vsyncpa [#allocation4], 0 }
   0x7   :  { %21 = vsyncpa [#allocation4 + $0x1], 0  ;;  %s2596_s30 = smov 0   ;;  %s2598_s10 = smov 0  }
   0x8   :  { %s2600_s11 = smov 0   ;;  %s2602_s12 = smov 0  }
   0x9 LB: > { %3122 = sst [smem:[#allocation15_spill]] %s2523_s30  ;;  %s2617_s13 = sadd.s32 4294967295, %s2535_s12   ;;  %s2535_s12 = sphi %s2602_s12, %s3146_s12   ;;  %s2531_s11 = sphi %s2600_s11, %s3145_s11   ;;  %s2527_s10 = sphi %s2598_s10, %s3144_s10   ;;  %s2523_s30 = sphi %s2596_s30, %s3143_s30  }
   0xa   : > { %s1704_s14 = sadd.s32 4294967294, %s2535_s12   ;;  %p47_p0 = scmp.ne.s32.totalorder %s2527_s10, %s2523_s30 }
   0xb   : > { %p3115_p1 = scmp.eq.s32.totalorder %s2617_s13, 0  ;;  %p245_p3 = scmp.eq.s32.totalorder %s1704_s14, 1 }
   0xc   : > { %p1705_p5 = scmp.ge.s32.totalorder %s2535_s12, 1  ;;  %p252_p7 = scmp.lt.s32.totalorder %s2535_s12, 3 }
   0xd   : > { %p2626_p4 = por %p3115_p1, %p47_p0  ;;  %p2631_p6 = por %p245_p3, %p47_p0 }
   0xe   : > { %p2636_p8 = pnand %p1705_p5, %p252_p7  ;;  %s2537_s18 = smov [#allocation5]  }
   0xf   : > { %s3123_s15 = scalar_select %p2626_p4, 1, 0 }
  0x10   : > { %s3124_s16 = scalar_select %p2631_p6, 1, 0 }
  0x11   : > { %s3126_s17 = scalar_select %p2636_p8, 1, 0 }
  0x12   : > { %3125 = sst [smem:[#allocation16_spill]] %s3124_s16  ;;  %s270_s19 = sshll.u32 %s2537_s18, 4  ;;  %s2640_s19 = int_to_ptr.vmem [resolvable:$true] %s270_s19 }
  0x13   : > { %p2178_p9 = pneg %p2636_p8  ;;  %s2538_s21 = smov [#allocation7]  }
  0x14   : > { %s286_s22 = sshll.u32 %s2538_s21, 4  ;;  %s2539_s23 = smov [#allocation8]   ;;  %s2651_s22 = int_to_ptr.vmem [resolvable:$true] %s286_s22 }
  0x15   : > { %p2647_p11 = pnand %p2178_p9, %p3115_p1  ;;  %s2653_s24 = sshll.u32 %s2539_s23, 4  ;;  %s303_s24 = int_to_ptr.vmem [resolvable:$true] %s2653_s24 }
  0x16   : > { %s2347_s27 = scalar_lea.hbm %s3108_s3, 1024 }
  0x17   : > { %p2348_p12 = scmp.ne.s32.totalorder %s3108_s3, %s2347_s27  ;;  %p2663_p13 = pneg %p2647_p11 }
  0x18   : > { %p2354_p5 = scmp.lt.u32.totalorder %s2347_s27, %s3108_s3 }
  0x19   : > { %p2350_p0 = pnand %p2663_p13, %p2348_p12 }
  0x1b   : > { %p2351_p3 = pneg %p2350_p0 }
  0x1d   : > { %p2356_p7 = pnand %p2354_p5, %p2351_p3 }
  0x1f   : > { %2359 = shalt.err (!%p2356_p7)
}
  0x20   : > { %s2360_s23 = scalar_lea.vmem %s2640_s19, 1024  ;;  %p2368_p2 = scmp.lt.s32.totalorder %s2640_s19, %s2640_s19 }
  0x21   : > { %p2361_p9 = scmp.ne.s32.totalorder %s2640_s19, %s2360_s23  ;;  %p2369_p6 = scmp.lt.s32.totalorder %s2360_s23, %s2360_s23 }
  0x23   : > { %p2363_p10 = pnand %p2361_p9, %p2663_p13  ;;  %p2370_p12 = por %p2369_p6, %p2368_p2 }
  0x25   : > { %p2364_p1 = pneg %p2363_p10 }
  0x27   : > { %p2371_p0 = pnand %p2370_p12, %p2364_p1 }
  0x29   : > { %2374 = shalt.err (!%p2371_p0)
}
  0x2a   : > { %s2540_s25 = smov 64   ;;  %s2541_s26 = smov 4  }
  0x2b   : > { %2181 = dma.hbm_to_vmem [thread:$0]  (!%p2647_p11), %s3108_s3, 1024, %s2640_s19, [#allocation6], %s2540_s25, %s2540_s25, %s2541_s26  }
  0x2c   : > { %s2375_s21 = scalar_lea.hbm %s3110_s5, 1024 }
  0x2d   : > { %p2376_p1 = scmp.ne.s32.totalorder %s3110_s5, %s2375_s21  ;;  %p2382_p10 = scmp.lt.u32.totalorder %s2375_s21, %s3110_s5 }
  0x2f   : > { %p2378_p2 = pnand %p2376_p1, %p2663_p13 }
  0x31   : > { %p2379_p6 = pneg %p2378_p2 }
  0x33   : > { %p2384_p3 = pnand %p2382_p10, %p2379_p6 }
  0x35   : > { %2387 = shalt.err (!%p2384_p3)
}
  0x36   : > { %s2388_s19 = scalar_lea.vmem %s2651_s22, 1024  ;;  %p2396_p12 = scmp.lt.s32.totalorder %s2651_s22, %s2651_s22 }
  0x37   : > { %p2389_p5 = scmp.ne.s32.totalorder %s2651_s22, %s2388_s19  ;;  %p2397_p0 = scmp.lt.s32.totalorder %s2388_s19, %s2388_s19 }
  0x39   : > { %p2391_p7 = pnand %p2389_p5, %p2663_p13  ;;  %p2398_p1 = por %p2397_p0, %p2396_p12 }
  0x3b   : > { %p2392_p9 = pneg %p2391_p7 }
  0x3d   : > { %p2399_p2 = pnand %p2398_p1, %p2392_p9 }
  0x3f   : > { %2402 = shalt.err (!%p2399_p2)
}
  0x40   : > { %2184 = dma.hbm_to_vmem [thread:$0]  (!%p2647_p11), %s3110_s5, 1024, %s2651_s22, [#allocation6], %s2540_s25, %s2540_s25, %s2541_s26  }
  0x41   : > { %s2403_s28 = scalar_lea.hbm %s3112_s7, 1024 }
  0x42   : > { %p2404_p6 = scmp.ne.s32.totalorder %s3112_s7, %s2403_s28  ;;  %p2410_p5 = scmp.lt.u32.totalorder %s2403_s28, %s3112_s7 }
  0x44   : > { %p2406_p10 = pnand %p2404_p6, %p2663_p13 }
  0x46   : > { %p2407_p3 = pneg %p2406_p10 }
  0x48   : > { %p2412_p7 = pnand %p2410_p5, %p2407_p3 }
  0x4a   : > { %2415 = shalt.err (!%p2412_p7)
}
  0x4b   : > { %s2416_s19 = scalar_lea.vmem %s303_s24, 1024  ;;  %p2424_p1 = scmp.lt.s32.totalorder %s303_s24, %s303_s24 }
  0x4c   : > { %p2417_p9 = scmp.ne.s32.totalorder %s303_s24, %s2416_s19  ;;  %p2425_p2 = scmp.lt.s32.totalorder %s2416_s19, %s2416_s19 }
  0x4e   : > { %p2419_p12 = pnand %p2417_p9, %p2663_p13  ;;  %p2426_p4 = por %p2425_p2, %p2424_p1 }
  0x50   : > { %p2420_p0 = pneg %p2419_p12 }
  0x52   : > { %p2427_p8 = pnand %p2426_p4, %p2420_p0 }
  0x54   : > { %2430 = shalt.err (!%p2427_p8)
}
  0x55   : > { %2187 = dma.hbm_to_vmem [thread:$0]  (!%p2647_p11), %s3112_s7, 1024, %s303_s24, [#allocation9], %s2540_s25, %s2540_s25, %s2541_s26  }
  0x56   : > { %s2736_s14 = sadd.s32 1, %s2535_s12   ;;  %s34_s30 = sadd.s32 1, %s2531_s11 }
  0x57   : > { %s31_s20 = ssub.s32 %s2535_s12, %s2736_s14  ;;  %p41_p8 = scmp.ne.s32.totalorder %s2531_s11, %s2527_s10 }
  0x58   : > { %p32_p4 = scmp.eq.s32.totalorder %s31_s20, 0  ;;  %p42_p13 = scmp.eq.s32.totalorder %s2535_s12, 0 }
  0x59   : > { %p2199_p6 = scmp.lt.s32.totalorder %s2535_s12, 2  ;;  %p3129_p3 = scmp.eq.s32.totalorder %s2617_s13, 1 }
  0x5a   : > { %s2746_s16 = scalar_select %p32_p4, %s2531_s11, %s34_s30  }
  0x5b   : > { %p43_p10 = por %p42_p13, %p41_p8  ;;  %p2750_p5 = por %p3129_p3, %p41_p8 }
  0x5c   : > { %s319_s28 = sand.u32 1, %s2531_s11   ;;  %s1801_s29 = sshll.u32 %s2535_s12, 11 }
  0x5d   : > { %s1710_s24 = sshll.u32 %s319_s28, 7  ;;  %s2759_s23 = scalar_lea.hbm %s3105_s0, %s1801_s29 }
  0x5e   : > { %s323_s19 = scalar_lea.vmem [#allocation2], %s1710_s24  ;;  %p2761_p11 = pnand %p2199_p6, %p43_p10 }
  0x5f   : > { %s330_s22 = sshll.u32 %s323_s19, 4  ;;  %s2767_s20 = scalar_lea.sflag [#allocation3], %s319_s28  ;;  %s2765_s22 = int_to_ptr.vmem [resolvable:$true] %s330_s22 }
  0x60   : > { %s2431_s30 = scalar_lea.hbm %s2759_s23, 2048  ;;  %p2433_p9 = pneg %p2761_p11 }
  0x61   : > { %p2432_p7 = scmp.ne.s32.totalorder %s2759_s23, %s2431_s30  ;;  %s2436_s18 = scalar_lea.hbm %s3105_s0, 4096 }
  0x62   : > { %p2437_p1 = scmp.lt.u32.totalorder %s2759_s23, %s3105_s0  ;;  %p2438_p2 = scmp.lt.u32.totalorder %s2436_s18, %s2431_s30 }
  0x63   : > { %p2434_p12 = pnand %p2433_p9, %p2432_p7  ;;  %p2440_p8 = scmp.lt.u32.totalorder %s2431_s30, %s2759_s23 }
  0x64   : > { %p2439_p4 = por %p2438_p2, %p2437_p1 }
  0x65   : > { %p2435_p0 = pneg %p2434_p12 }
  0x66   : > { %p2441_p13 = por %p2440_p8, %p2439_p4 }
  0x68   : > { %p2442_p6 = pnand %p2441_p13, %p2435_p0 }
  0x6a   : > { %2445 = shalt.err (!%p2442_p6)
}
  0x6b   : > { %s2446_s28 = scalar_lea.vmem %s2765_s22, 2048  ;;  %s2542_s29 = smov [#allocation2]  }
  0x6c   : > { %p2447_p10 = scmp.ne.s32.totalorder %s2765_s22, %s2446_s28  ;;  %s2451_s24 = sshll.u32 %s2542_s29, 4  ;;  %s2452_s24 = int_to_ptr.vmem [resolvable:$false] %s2451_s24 }
  0x6d   : > { %s2453_s21 = scalar_lea.vmem %s2452_s24, 4096  ;;  %p2454_p12 = scmp.lt.s32.totalorder %s2765_s22, %s2452_s24 }
  0x6e   : > { %p2449_p3 = pnand %p2447_p10, %p2433_p9  ;;  %p2455_p1 = scmp.lt.s32.totalorder %s2453_s21, %s2446_s28 }
  0x70   : > { %p2450_p7 = pneg %p2449_p3  ;;  %p2456_p2 = por %p2455_p1, %p2454_p12 }
  0x72   : > { %p2457_p4 = pnand %p2456_p2, %p2450_p7 }
  0x74   : > { %2460 = shalt.err (!%p2457_p4)
}
  0x75   : > { %2191 = dma.hbm_to_vmem [thread:$0]  (!%p2761_p11), %s2759_s23, 2048, %s2765_s22, %s2767_s20, %s2540_s25, %s2540_s25, %s2541_s26  }
  0x76   : > { %p3132_p9 = scmp.ne.s32.totalorder %s3126_s17, 0 }
  0x77   : > { %s2801_s30 = sand.u32 (!%p3132_p9), 1, %s2527_s10   ;;  %p3133_p0 = scmp.ne.s32.totalorder (!%p3132_p9), %s3123_s15, 0 }
  0x78   : > { %342 = sbr.rel (%p3132_p9) target bundleno = 917 (0x395), region = 56  ;;  %s1714_s18 = sshll.u32 (!%p3132_p9), %s2801_s30, 7 }
  0x79   : > { %s345_s19 = scalar_lea.sflag (!%p3132_p9), [#allocation3], %s2801_s30  ;;  %s2807_s9 = scalar_lea.vmem (!%p3132_p9), [#allocation2], %s1714_s18 }
  0x7f   : > { %2506 = dma.done.wait (%p3133_p0), %s345_s19, 2048  }
  0x80   : > { %2508 = vsyncadd (%p3133_p0), %s345_s19, 4294965248  ;;  %p3134_p11 = scmp.eq.s32.totalorder %s2617_s13, 0 }
  0x82   : > { %2510 = dma.done.wait (%p3134_p11), [#allocation6], 2048   ;;  %p3135_p8 = pmov %p3134_p11 }
  0x84   : > { %2512 = vsyncadd (%p3135_p8), [#allocation6], 4294965248  ;;  %p3136_p13 = pmov %p3135_p8 }
  0x85   : > { %p3137_p6 = pmov %p3135_p8 }
  0x86   : > { %2514 = dma.done.wait (%p3136_p13), [#allocation9], 1024  }
  0x87   : > { %2516 = vsyncadd (%p3137_p6), [#allocation9], 4294966272  ;;  %v2243_v0 = vld [vmem:[#allocation5] sm:$0xff]   ;;  %v2244_v1 = vld [vmem:[#allocation5 + $0x8] sm:$0xff]   ;;  %s2960_s21 = scalar_lea.vmem [#allocation10], %s1714_s18  ;;  %s1834_s18 = sshll.u32 %s2617_s13, 11 }
  0x88   : > { %2002 = vmatprep.subr.bf16.mxu0 %v2243_v0  ;;  %2146 = vmatprep.subr.bf16.mxu1 %v2243_v0  ;;  %v2245_v2 = vld [vmem:[#allocation5 + $0x10] sm:$0xff]   ;;  %v2246_v3 = vld [vmem:[#allocation5 + $0x18] sm:$0xff]   ;;  %v2251_v4 = vld [vmem:[%s2807_s9] sm:$0xff]   ;;  %s1602_s19 = sshll.u32 %s2960_s21, 4  ;;  %s3138_s17 = sld [smem:[#allocation17_spill]]  ;;  %s3059_s19 = int_to_ptr.vmem [resolvable:$true] %s1602_s19 }
  0x89   : > { %2003 = vmatpush3.bf16.msra.mxu0 %v2243_v0  ;;  %2154 = vmatpush3.bf16.msra.mxu1 %v2243_v0  ;;  %v2247_v5 = vld [vmem:[#allocation5 + $0x20] sm:$0xff]   ;;  %v2248_v6 = vld [vmem:[#allocation5 + $0x28] sm:$0xff]   ;;  %v2249_v8 = vld [vmem:[#allocation5 + $0x30] sm:$0xff]   ;;  %s1589_s13 = scalar_lea.sflag [#allocation4], %s2801_s30  ;;  %s2461_s26 = scalar_lea.vmem %s3059_s19, 2048 }
  0x8a   : > { %2004 = vmatprep.subr.bf16.mxu0 %v2244_v1  ;;  %2147 = vmatprep.subr.bf16.mxu1 %v2244_v1  ;;  %v2259_v7 = vld [vmem:[%s2807_s9 + $0x40] sm:$0xff]   ;;  %v2250_v9 = vld [vmem:[#allocation5 + $0x38] sm:$0xff]   ;;  %v2252_v10 = vld [vmem:[%s2807_s9 + $0x8] sm:$0xff]   ;;  %p2462_p10 = scmp.ne.s32.totalorder %s3059_s19, %s2461_s26  ;;  %s2543_s23 = smov [#allocation10]  }
  0x8b   : > { %2018 = vmatprep.mubr.bf16.mxu0 %v2251_v4  ;;  %2034 = vmatprep.mubr.bf16.mxu1 %v2259_v7  ;;  %v2260_v11 = vld [vmem:[%s2807_s9 + $0x48] sm:$0xff]   ;;  %v2267_v12 = vld [vmem:[#allocation7] sm:$0xff]   ;;  %v2253_v13 = vld [vmem:[%s2807_s9 + $0x10] sm:$0xff]   ;;  %s2465_s22 = sshll.u32 %s2543_s23, 4  ;;  %s2466_s22 = int_to_ptr.vmem [resolvable:$false] %s2465_s22 }
  0x8c   : > { %v2261_v14 = vld [vmem:[%s2807_s9 + $0x50] sm:$0xff]   ;;  %v2268_v15 = vld [vmem:[#allocation7 + $0x8] sm:$0xff]   ;;  %v2254_v17 = vld [vmem:[%s2807_s9 + $0x18] sm:$0xff]   ;;  %p2463_p3 = pnand %p2462_p10, %p2750_p5  ;;  %s2467_s20 = scalar_lea.vmem %s2466_s22, 4096 }
  0x8d   : > { %2005 = vmatpush3.bf16.msra.mxu0 %v2244_v1  ;;  %2155 = vmatpush3.bf16.msra.mxu1 %v2244_v1  ;;  %v2269_v16 = vld [vmem:[#allocation7 + $0x10] sm:$0xff]   ;;  %v2262_v18 = vld [vmem:[%s2807_s9 + $0x58] sm:$0xff]   ;;  %v2255_v19 = vld [vmem:[%s2807_s9 + $0x20] sm:$0xff]   ;;  %p2468_p12 = scmp.lt.s32.totalorder %s3059_s19, %s2466_s22  ;;  %p2469_p1 = scmp.lt.s32.totalorder %s2467_s20, %s2461_s26 }
  0x8e   : > { %2006 = vmatprep.subr.bf16.mxu0 %v2245_v2  ;;  %2148 = vmatprep.subr.bf16.mxu1 %v2245_v2  ;;  %v2263_v20 = vld [vmem:[%s2807_s9 + $0x60] sm:$0xff]   ;;  %v2270_v21 = vld [vmem:[#allocation7 + $0x18] sm:$0xff]   ;;  %v2256_v23 = vld [vmem:[%s2807_s9 + $0x28] sm:$0xff]   ;;  %s3057_s25 = scalar_lea.hbm %s3138_s17, %s1834_s18  ;;  %p2464_p7 = pneg %p2463_p3 }
  0x8f   : > { %v2271_v22 = vld [vmem:[#allocation7 + $0x20] sm:$0xff]   ;;  %v2264_v24 = vld [vmem:[%s2807_s9 + $0x68] sm:$0xff]   ;;  %v2257_v25 = vld [vmem:[%s2807_s9 + $0x30] sm:$0xff]   ;;  %p2470_p2 = por %p2469_p1, %p2468_p12 }
  0x90   : > { %v2265_v26 = vld [vmem:[%s2807_s9 + $0x70] sm:$0xff]   ;;  %v2272_v27 = vld [vmem:[#allocation7 + $0x28] sm:$0xff]   ;;  %v2258_v28 = vld [vmem:[%s2807_s9 + $0x38] sm:$0xff]  }
  0x91   : > { %2007 = vmatpush3.bf16.msra.mxu0 %v2245_v2  ;;  %2156 = vmatpush3.bf16.msra.mxu1 %v2245_v2  ;;  %v2266_v29 = vld [vmem:[%s2807_s9 + $0x78] sm:$0xff]   ;;  %v2273_v30 = vld [vmem:[#allocation7 + $0x30] sm:$0xff]   ;;  %v2275_v32 = vld [vmem:[#allocation8] sm:$0xff]   ;;  %p2471_p4 = pnand %p2470_p2, %p2464_p7 }
  0x92   : > { %2008 = vmatprep.subr.bf16.mxu0 %v2246_v3  ;;  %2149 = vmatprep.subr.bf16.mxu1 %v2246_v3  ;;  %v2274_v31 = vld [vmem:[#allocation7 + $0x38] sm:$0xff]   ;;  %v2276_v33 = vld [vmem:[#allocation8 + $0x8] sm:$0xff]   ;;  %v2277_v34 = vld [vmem:[#allocation8 + $0x10] sm:$0xff]  }
  0x93   : > { %v2278_v35 = vld [vmem:[#allocation8 + $0x18] sm:$0xff]   ;;  %v2279_v36 = vld [vmem:[#allocation8 + $0x20] sm:$0xff]   ;;  %v2280_v37 = vld [vmem:[#allocation8 + $0x28] sm:$0xff]  }
  0x94   : > { %v2840_v38 = vld [vmem:[%s3109_s4] ss:$0 sm:$0xff] }
  0x95   : > { %2009 = vmatpush3.bf16.msra.mxu0 %v2246_v3  ;;  %2157 = vmatpush3.bf16.msra.mxu1 %v2246_v3 }
  0x96   : > { %2010 = vmatprep.subr.bf16.mxu0 %v2247_v5  ;;  %2150 = vmatprep.subr.bf16.mxu1 %v2247_v5 }
  0x99   : > { %2011 = vmatpush3.bf16.msra.mxu0 %v2247_v5  ;;  %2158 = vmatpush3.bf16.msra.mxu1 %v2247_v5 }
  0x9a   : > { %2012 = vmatprep.subr.bf16.mxu0 %v2248_v6  ;;  %2151 = vmatprep.subr.bf16.mxu1 %v2248_v6 }
  0x9d   : > { %2013 = vmatpush3.bf16.msra.mxu0 %v2248_v6  ;;  %2159 = vmatpush3.bf16.msra.mxu1 %v2248_v6 }
  0x9e   : > { %2014 = vmatprep.subr.bf16.mxu0 %v2249_v8  ;;  %2152 = vmatprep.subr.bf16.mxu1 %v2249_v8 }
  0xa1   : > { %2015 = vmatpush3.bf16.msra.mxu0 %v2249_v8  ;;  %2160 = vmatpush3.bf16.msra.mxu1 %v2249_v8 }
  0xa2   : > { %2016 = vmatprep.subr.bf16.mxu0 %v2250_v9  ;;  %2153 = vmatprep.subr.bf16.mxu1 %v2250_v9 }
  0xa5   : > { %2017 = vmatpush3.bf16.msra.mxu0 %v2250_v9  ;;  %2161 = vmatpush3.bf16.msra.mxu1 %v2250_v9 }
  0xa6   : > { %2050 = vmatprep.subr.bf16.mxu1 %v2267_v12  ;;  %2098 = vmatprep.subr.bf16.mxu0 %v2275_v32 }
  0xa8   : > { %2019 = vmatmul.mubr.bf16.vlgmr.msra.gmra.mrb[0].mxu0 %v2252_v10  ;;  %2035 = vmatmul.mubr.bf16.vlgmr.msra.gmra.mrb[0].mxu1 %v2260_v11 }
  0xa9   : > { %2022 = vmatprep.mubr.bf16.mxu0 %v2253_v13  ;;  %2038 = vmatprep.mubr.bf16.mxu1 %v2261_v14 }
  0xaa   : > { %2051 = vmatpush3.bf16.msra.mxu1 %v2267_v12  ;;  %2099 = vmatpush3.bf16.msra.mxu0 %v2275_v32 }
  0xab   : > { %2052 = vmatprep.subr.bf16.mxu1 %v2268_v15  ;;  %2100 = vmatprep.subr.bf16.mxu0 %v2276_v33 }
  0xae   : > { %2053 = vmatpush3.bf16.msra.mxu1 %v2268_v15  ;;  %2101 = vmatpush3.bf16.msra.mxu0 %v2276_v33 }
  0xaf   : > { %2054 = vmatprep.subr.bf16.mxu1 %v2269_v16  ;;  %2102 = vmatprep.subr.bf16.mxu0 %v2277_v34 }
  0xb0   : > { %2023 = vmatmul.mubr.bf16.gmra.mrb[4].mxu0 %v2254_v17  ;;  %2039 = vmatmul.mubr.bf16.gmra.mrb[4].mxu1 %v2262_v18 }
  0xb1   : > { %2026 = vmatprep.mubr.bf16.mxu0 %v2255_v19  ;;  %2042 = vmatprep.mubr.bf16.mxu1 %v2263_v20 }
  0xb2   : > { %2055 = vmatpush3.bf16.msra.mxu1 %v2269_v16  ;;  %2103 = vmatpush3.bf16.msra.mxu0 %v2277_v34 }
  0xb3   : > { %2056 = vmatprep.subr.bf16.mxu1 %v2270_v21  ;;  %2104 = vmatprep.subr.bf16.mxu0 %v2278_v35 }
  0xb6   : > { %2057 = vmatpush3.bf16.msra.mxu1 %v2270_v21  ;;  %2105 = vmatpush3.bf16.msra.mxu0 %v2278_v35 }
  0xb7   : > { %2058 = vmatprep.subr.bf16.mxu1 %v2271_v22  ;;  %2106 = vmatprep.subr.bf16.mxu0 %v2279_v36 }
  0xb8   : > { %2027 = vmatmul.mubr.bf16.gmra.mrb[8].mxu0 %v2256_v23  ;;  %2043 = vmatmul.mubr.bf16.gmra.mrb[8].mxu1 %v2264_v24 }
  0xb9   : > { %2030 = vmatprep.mubr.bf16.mxu0 %v2257_v25  ;;  %2046 = vmatprep.mubr.bf16.mxu1 %v2265_v26 }
  0xba   : > { %2059 = vmatpush3.bf16.msra.mxu1 %v2271_v22  ;;  %2107 = vmatpush3.bf16.msra.mxu0 %v2279_v36 }
  0xbb   : > { %2060 = vmatprep.subr.bf16.mxu1 %v2272_v27  ;;  %2108 = vmatprep.subr.bf16.mxu0 %v2280_v37 }
  0xbe   : > { %2061 = vmatpush3.bf16.msra.mxu1 %v2272_v27  ;;  %2109 = vmatpush3.bf16.msra.mxu0 %v2280_v37 }
  0xbf   : > { %2062 = vmatprep.subr.bf16.mxu1 %v2273_v30 }
  0xc0   : > { %2031 = vmatmul.mubr.bf16.gmra.mrb[12].mxu0 %v2258_v28  ;;  %2047 = vmatmul.mubr.bf16.gmra.mrb[12].mxu1 %v2266_v29 }
  0xc2   : > { %2063 = vmatpush3.bf16.msra.mxu1 %v2273_v30 }
  0xc3   : > { %2064 = vmatprep.subr.bf16.mxu1 %v2274_v31 }
  0xc6   : > { %2065 = vmatpush3.bf16.msra.mxu1 %v2274_v31 }
 0x17b   : > { %v2020_v39 = vpop.f32.mrb[0].mxu0  ;;  %v2036_v40 = vpop.f32.mrb[0].mxu1 }
 0x17c   : > { %v640_v41 = vadd.f32 %v2020_v39, %v2840_v38  ;;  %v631_v42 = vpop.f32.mrb[1].mxu0  ;;  %v704_v43 = vadd.f32 %v2036_v40, %v2840_v38  ;;  %v695_v44 = vpop.f32.mrb[1].mxu1 }
 0x17d   : > { %v632_v45 = vadd.f32 %v2840_v38, %v631_v42  ;;  %v2021_v46 = vpop.f32.mrb[2].mxu0  ;;  %v696_v47 = vadd.f32 %v2840_v38, %v695_v44  ;;  %v2037_v48 = vpop.f32.mrb[2].mxu1 }
 0x17e   : > { %v643_v49 = vadd.f32 %v2021_v46, %v2840_v38  ;;  %v634_v50 = vpop.f32.mrb[3].mxu0  ;;  %v776_v51 = vmax.f32 %v704_v43, 0.0  ;;  %v707_v52 = vadd.f32 %v2037_v48, %v2840_v38  ;;  %v698_v53 = vpop.f32.mrb[3].mxu1  ;;  %v760_v57 = vmax.f32 %v640_v41, 0.0 }
 0x17f   : > { %v635_v54 = vadd.f32 %v2840_v38, %v634_v50  ;;  %v774_v55 = vmax.f32 %v696_v47, 0.0  ;;  %v699_v56 = vadd.f32 %v2840_v38, %v698_v53  ;;  %v758_v60 = vmax.f32 %v632_v45, 0.0 }
 0x180   : > { %v761_v58 = vmax.f32 %v643_v49, 0.0  ;;  %v777_v59 = vmax.f32 %v707_v52, 0.0 }
 0x181   : > { %v759_v61 = vmax.f32 %v635_v54, 0.0  ;;  %v775_v62 = vmax.f32 %v699_v56, 0.0 }
 0x182   : > { %v808_v63 = vpack.c.bf16 %v761_v58, %v760_v57  ;;  %v2850_v0 = vpack.c.bf16 %v777_v59, %v776_v51 }
 0x183   : > { %v807_v1 = vpack.c.bf16 %v759_v61, %v758_v60  ;;  %v2024_v2 = vpop.f32.mrb[4].mxu0  ;;  %v2852_v3 = vpack.c.bf16 %v775_v62, %v774_v55  ;;  %v2040_v4 = vpop.f32.mrb[4].mxu1 }
 0x184   : > { %v656_v5 = vadd.f32 %v2024_v2, %v2840_v38  ;;  %v647_v6 = vpop.f32.mrb[5].mxu0  ;;  %v720_v7 = vadd.f32 %v2040_v4, %v2840_v38  ;;  %v711_v8 = vpop.f32.mrb[5].mxu1 }
 0x185   : > { %v648_v9 = vadd.f32 %v2840_v38, %v647_v6  ;;  %v2025_v10 = vpop.f32.mrb[6].mxu0  ;;  %2066 = vmatprep.mubr.bf16.mxu1 %v807_v1  ;;  %v712_v11 = vadd.f32 %v2840_v38, %v711_v8  ;;  %v2041_v12 = vpop.f32.mrb[6].mxu1 }
 0x186   : > { %v659_v13 = vadd.f32 %v2025_v10, %v2840_v38  ;;  %v650_v14 = vpop.f32.mrb[7].mxu0  ;;  %2067 = vmatmul.mubr.bf16.vlgmr.msra.gmra.mrb[16].mxu1 %v808_v63  ;;  %v780_v15 = vmax.f32 %v720_v7, 0.0  ;;  %v723_v16 = vadd.f32 %v2041_v12, %v2840_v38  ;;  %v714_v17 = vpop.f32.mrb[7].mxu1  ;;  %v764_v21 = vmax.f32 %v656_v5, 0.0 }
 0x187   : > { %v651_v18 = vadd.f32 %v2840_v38, %v650_v14  ;;  %v778_v19 = vmax.f32 %v712_v11, 0.0  ;;  %v715_v20 = vadd.f32 %v2840_v38, %v714_v17  ;;  %v762_v24 = vmax.f32 %v648_v9, 0.0 }
 0x188   : > { %v765_v22 = vmax.f32 %v659_v13, 0.0  ;;  %v781_v23 = vmax.f32 %v723_v16, 0.0 }
 0x189   : > { %v763_v25 = vmax.f32 %v651_v18, 0.0  ;;  %v779_v26 = vmax.f32 %v715_v20, 0.0 }
 0x18a   : > { %v810_v27 = vpack.c.bf16 %v765_v22, %v764_v21  ;;  %v2862_v28 = vpack.c.bf16 %v781_v23, %v780_v15 }
 0x18b   : > { %v809_v29 = vpack.c.bf16 %v763_v25, %v762_v24  ;;  %v2028_v30 = vpop.f32.mrb[8].mxu0  ;;  %v2864_v31 = vpack.c.bf16 %v779_v26, %v778_v19  ;;  %v2044_v32 = vpop.f32.mrb[8].mxu1  ;;  %v2282_v26 = vld [vmem:[#allocation8 + $0x38] sm:$0xff]  }
 0x18c   : > { %v672_v33 = vadd.f32 %v2028_v30, %v2840_v38  ;;  %v663_v34 = vpop.f32.mrb[9].mxu0  ;;  %v736_v35 = vadd.f32 %v2044_v32, %v2840_v38  ;;  %v727_v36 = vpop.f32.mrb[9].mxu1 }
 0x18d   : > { %v664_v37 = vadd.f32 %v2840_v38, %v663_v34  ;;  %v2029_v39 = vpop.f32.mrb[10].mxu0  ;;  %2070 = vmatprep.mubr.bf16.mxu1 %v809_v29  ;;  %v728_v40 = vadd.f32 %v2840_v38, %v727_v36  ;;  %v2045_v41 = vpop.f32.mrb[10].mxu1 }
 0x18e   : > { %v675_v42 = vadd.f32 %v2029_v39, %v2840_v38  ;;  %v666_v43 = vpop.f32.mrb[11].mxu0  ;;  %2071 = vmatmul.mubr.bf16.gmra.mrb[20].mxu1 %v810_v27  ;;  %v784_v44 = vmax.f32 %v736_v35, 0.0  ;;  %v739_v45 = vadd.f32 %v2045_v41, %v2840_v38  ;;  %v730_v46 = vpop.f32.mrb[11].mxu1  ;;  %v768_v50 = vmax.f32 %v672_v33, 0.0 }
 0x18f   : > { %v667_v47 = vadd.f32 %v2840_v38, %v666_v43  ;;  %v782_v48 = vmax.f32 %v728_v40, 0.0  ;;  %v731_v49 = vadd.f32 %v2840_v38, %v730_v46  ;;  %v766_v53 = vmax.f32 %v664_v37, 0.0 }
 0x190   : > { %v769_v51 = vmax.f32 %v675_v42, 0.0  ;;  %v785_v52 = vmax.f32 %v739_v45, 0.0 }
 0x191   : > { %v767_v54 = vmax.f32 %v667_v47, 0.0  ;;  %v783_v55 = vmax.f32 %v731_v49, 0.0 }
 0x192   : > { %v812_v56 = vpack.c.bf16 %v769_v51, %v768_v50  ;;  %v820_v57 = vpack.c.bf16 %v785_v52, %v784_v44 }
 0x193   : > { %v811_v58 = vpack.c.bf16 %v767_v54, %v766_v53  ;;  %v2032_v59 = vpop.f32.mrb[12].mxu0  ;;  %v819_v60 = vpack.c.bf16 %v783_v55, %v782_v48  ;;  %v2048_v61 = vpop.f32.mrb[12].mxu1 }
 0x194   : > { %v688_v62 = vadd.f32 %v2032_v59, %v2840_v38  ;;  %v679_v63 = vpop.f32.mrb[13].mxu0  ;;  %v752_v1 = vadd.f32 %v2048_v61, %v2840_v38  ;;  %v743_v2 = vpop.f32.mrb[13].mxu1 }
 0x195   : > { %v680_v4 = vadd.f32 %v2840_v38, %v679_v63  ;;  %v2033_v5 = vpop.f32.mrb[14].mxu0  ;;  %2074 = vmatprep.mubr.bf16.mxu1 %v811_v58  ;;  %v744_v6 = vadd.f32 %v2840_v38, %v743_v2  ;;  %v2049_v7 = vpop.f32.mrb[14].mxu1 }
 0x196   : > { %v691_v8 = vadd.f32 %v2033_v5, %v2840_v38  ;;  %v682_v9 = vpop.f32.mrb[15].mxu0  ;;  %2075 = vmatmul.mubr.bf16.gmra.mrb[24].mxu1 %v812_v56  ;;  %v788_v10 = vmax.f32 %v752_v1, 0.0  ;;  %v755_v11 = vadd.f32 %v2049_v7, %v2840_v38  ;;  %v746_v12 = vpop.f32.mrb[15].mxu1  ;;  %v772_v16 = vmax.f32 %v688_v62, 0.0 }
 0x197   : > { %v683_v13 = vadd.f32 %v2840_v38, %v682_v9  ;;  %v786_v14 = vmax.f32 %v744_v6, 0.0  ;;  %v747_v15 = vadd.f32 %v2840_v38, %v746_v12  ;;  %v770_v19 = vmax.f32 %v680_v4, 0.0  ;;  %v2281_v38 = vld [vmem:[#allocation8 + $0x30] sm:$0xff]  }
 0x198   : > { %v773_v17 = vmax.f32 %v691_v8, 0.0  ;;  %v789_v18 = vmax.f32 %v755_v11, 0.0  ;;  %2110 = vmatprep.subr.bf16.mxu0 %v2281_v38 }
 0x199   : > { %v771_v20 = vmax.f32 %v683_v13, 0.0  ;;  %v787_v21 = vmax.f32 %v747_v15, 0.0  ;;  %2111 = vmatpush3.bf16.msra.mxu0 %v2281_v38 }
 0x19a   : > { %v814_v22 = vpack.c.bf16 %v773_v17, %v772_v16  ;;  %v822_v23 = vpack.c.bf16 %v789_v18, %v788_v10  ;;  %2112 = vmatprep.subr.bf16.mxu0 %v2282_v26 }
 0x19b   : > { %v813_v24 = vpack.c.bf16 %v771_v20, %v770_v19  ;;  %v821_v25 = vpack.c.bf16 %v787_v21, %v786_v14 }
 0x19d   : > { %2078 = vmatprep.mubr.bf16.mxu1 %v813_v24  ;;  %2113 = vmatpush3.bf16.msra.mxu0 %v2282_v26 }
 0x19e   : > { %2079 = vmatmul.mubr.bf16.gmra.mrb[28].mxu1 %v814_v22 }
 0x19f   : > { %2082 = vmatprep.mubr.bf16.mxu1 %v2852_v3  ;;  %v2889_v3 = vld [vmem:[%s3111_s6] ss:$0 sm:$0xff] }
 0x1a6   : > { %2083 = vmatmul.mubr.bf16.gmra.mrb[32].mxu1 %v2850_v0 }
 0x1a7   : > { %2086 = vmatprep.mubr.bf16.mxu1 %v2864_v31 }
 0x1ae   : > { %2087 = vmatmul.mubr.bf16.gmra.mrb[36].mxu1 %v2862_v28 }
 0x1af   : > { %2090 = vmatprep.mubr.bf16.mxu1 %v819_v60 }
 0x1b6   : > { %2091 = vmatmul.mubr.bf16.gmra.mrb[40].mxu1 %v820_v57 }
 0x1b7   : > { %2094 = vmatprep.mubr.bf16.mxu1 %v821_v25 }
 0x1be   : > { %2095 = vmatmul.mubr.bf16.gmra.mrb[44].mxu1 %v822_v23 }
 0x259   : > { %v2068_v0 = vpop.f32.mrb[16].mxu1 }
 0x25a   : > { %v920_v27 = vadd.f32 %v2068_v0, %v2889_v3  ;;  %v911_v29 = vpop.f32.mrb[17].mxu1 }
 0x25b   : > { %v912_v28 = vadd.f32 %v2889_v3, %v911_v29  ;;  %v2069_v30 = vpop.f32.mrb[18].mxu1 }
 0x25c   : > { %v923_v31 = vadd.f32 %v2069_v30, %v2889_v3  ;;  %v914_v32 = vpop.f32.mrb[19].mxu1  ;;  %v1040_v34 = vmax.f32 %v920_v27, 0.0 }
 0x25d   : > { %v915_v33 = vadd.f32 %v2889_v3, %v914_v32  ;;  %v1038_v36 = vmax.f32 %v912_v28, 0.0 }
 0x25e   : > { %v1041_v35 = vmax.f32 %v923_v31, 0.0 }
 0x25f   : > { %v1039_v37 = vmax.f32 %v915_v33, 0.0 }
 0x260   : > { %v1088_v39 = vpack.c.bf16 %v1041_v35, %v1040_v34 }
 0x261   : > { %v1087_v40 = vpack.c.bf16 %v1039_v37, %v1038_v36  ;;  %v2072_v41 = vpop.f32.mrb[20].mxu1 }
 0x262   : > { %v936_v42 = vadd.f32 %v2072_v41, %v2889_v3  ;;  %v927_v43 = vpop.f32.mrb[21].mxu1 }
 0x263   : > { %v928_v44 = vadd.f32 %v2889_v3, %v927_v43  ;;  %v2073_v45 = vpop.f32.mrb[22].mxu1  ;;  %2114 = vmatprep.mubr.bf16.mxu0 %v1087_v40 }
 0x264   : > { %v939_v46 = vadd.f32 %v2073_v45, %v2889_v3  ;;  %v930_v47 = vpop.f32.mrb[23].mxu1  ;;  %2115 = vmatmul.mubr.bf16.vlgmr.msra.gmra.mrb[16].mxu0 %v1088_v39  ;;  %v1044_v49 = vmax.f32 %v936_v42, 0.0 }
 0x265   : > { %v931_v48 = vadd.f32 %v2889_v3, %v930_v47  ;;  %v1042_v51 = vmax.f32 %v928_v44, 0.0 }
 0x266   : > { %v1045_v50 = vmax.f32 %v939_v46, 0.0 }
 0x267   : > { %v1043_v52 = vmax.f32 %v931_v48, 0.0 }
 0x268   : > { %v1090_v53 = vpack.c.bf16 %v1045_v50, %v1044_v49 }
 0x269   : > { %v1089_v54 = vpack.c.bf16 %v1043_v52, %v1042_v51  ;;  %v2076_v55 = vpop.f32.mrb[24].mxu1 }
 0x26a   : > { %v952_v56 = vadd.f32 %v2076_v55, %v2889_v3  ;;  %v943_v57 = vpop.f32.mrb[25].mxu1 }
 0x26b   : > { %v944_v58 = vadd.f32 %v2889_v3, %v943_v57  ;;  %v2077_v59 = vpop.f32.mrb[26].mxu1  ;;  %2118 = vmatprep.mubr.bf16.mxu0 %v1089_v54 }
 0x26c   : > { %v955_v60 = vadd.f32 %v2077_v59, %v2889_v3  ;;  %v946_v61 = vpop.f32.mrb[27].mxu1  ;;  %2119 = vmatmul.mubr.bf16.gmra.mrb[20].mxu0 %v1090_v53  ;;  %v1048_v63 = vmax.f32 %v952_v56, 0.0 }
 0x26d   : > { %v947_v62 = vadd.f32 %v2889_v3, %v946_v61  ;;  %v1046_v2 = vmax.f32 %v944_v58, 0.0 }
 0x26e   : > { %v1049_v1 = vmax.f32 %v955_v60, 0.0 }
 0x26f   : > { %v1047_v4 = vmax.f32 %v947_v62, 0.0 }
 0x270   : > { %v1092_v5 = vpack.c.bf16 %v1049_v1, %v1048_v63 }
 0x271   : > { %v1091_v6 = vpack.c.bf16 %v1047_v4, %v1046_v2  ;;  %v2080_v7 = vpop.f32.mrb[28].mxu1 }
 0x272   : > { %v968_v8 = vadd.f32 %v2080_v7, %v2889_v3  ;;  %v959_v9 = vpop.f32.mrb[29].mxu1 }
 0x273   : > { %v960_v10 = vadd.f32 %v2889_v3, %v959_v9  ;;  %v2081_v11 = vpop.f32.mrb[30].mxu1  ;;  %2122 = vmatprep.mubr.bf16.mxu0 %v1091_v6 }
 0x274   : > { %v971_v12 = vadd.f32 %v2081_v11, %v2889_v3  ;;  %v962_v13 = vpop.f32.mrb[31].mxu1  ;;  %2123 = vmatmul.mubr.bf16.gmra.mrb[24].mxu0 %v1092_v5  ;;  %v1052_v15 = vmax.f32 %v968_v8, 0.0 }
 0x275   : > { %v963_v14 = vadd.f32 %v2889_v3, %v962_v13  ;;  %v1050_v17 = vmax.f32 %v960_v10, 0.0 }
 0x276   : > { %v1053_v16 = vmax.f32 %v971_v12, 0.0 }
 0x277   : > { %v1051_v18 = vmax.f32 %v963_v14, 0.0  ;;  %v2926_v14 = vld [vmem:[%s3113_s8] ss:$0 sm:$0xff] }
 0x278   : > { %v1094_v19 = vpack.c.bf16 %v1053_v16, %v1052_v15 }
 0x279   : > { %v1093_v20 = vpack.c.bf16 %v1051_v18, %v1050_v17  ;;  %v2084_v21 = vpop.f32.mrb[32].mxu1 }
 0x27a   : > { %v984_v22 = vadd.f32 %v2084_v21, %v2889_v3  ;;  %v975_v23 = vpop.f32.mrb[33].mxu1 }
 0x27b   : > { %v976_v24 = vadd.f32 %v2889_v3, %v975_v23  ;;  %v2085_v25 = vpop.f32.mrb[34].mxu1  ;;  %2126 = vmatprep.mubr.bf16.mxu0 %v1093_v20 }
 0x27c   : > { %v987_v38 = vadd.f32 %v2085_v25, %v2889_v3  ;;  %v978_v26 = vpop.f32.mrb[35].mxu1  ;;  %2127 = vmatmul.mubr.bf16.gmra.mrb[28].mxu0 %v1094_v19  ;;  %v1056_v27 = vmax.f32 %v984_v22, 0.0 }
 0x27d   : > { %v979_v0 = vadd.f32 %v2889_v3, %v978_v26  ;;  %v1054_v28 = vmax.f32 %v976_v24, 0.0  ;;  %v2937_v26 = vld [vmem:[%s3106_s1] ss:$0 sm:$0xff] }
 0x27e   : > { %v1057_v29 = vmax.f32 %v987_v38, 0.0 }
 0x27f   : > { %v1055_v30 = vmax.f32 %v979_v0, 0.0 }
 0x280   : > { %v1096_v31 = vpack.c.bf16 %v1057_v29, %v1056_v27 }
 0x281   : > { %v1095_v32 = vpack.c.bf16 %v1055_v30, %v1054_v28  ;;  %v2088_v33 = vpop.f32.mrb[36].mxu1 }
 0x282   : > { %v1000_v34 = vadd.f32 %v2088_v33, %v2889_v3  ;;  %v991_v35 = vpop.f32.mrb[37].mxu1  ;;  %v2945_v33 = vld [vmem:[%s3107_s2] ss:$0 sm:$0xff] }
 0x283   : > { %v992_v36 = vadd.f32 %v2889_v3, %v991_v35  ;;  %v2089_v37 = vpop.f32.mrb[38].mxu1  ;;  %2130 = vmatprep.mubr.bf16.mxu0 %v1095_v32 }
 0x284   : > { %v1003_v39 = vadd.f32 %v2089_v37, %v2889_v3  ;;  %v994_v40 = vpop.f32.mrb[39].mxu1  ;;  %2131 = vmatmul.mubr.bf16.gmra.mrb[32].mxu0 %v1096_v31  ;;  %v1060_v42 = vmax.f32 %v1000_v34, 0.0 }
 0x285   : > { %v995_v41 = vadd.f32 %v2889_v3, %v994_v40  ;;  %v1058_v44 = vmax.f32 %v992_v36, 0.0 }
 0x286   : > { %v1061_v43 = vmax.f32 %v1003_v39, 0.0 }
 0x287   : > { %v1059_v45 = vmax.f32 %v995_v41, 0.0 }
 0x288   : > { %v1098_v46 = vpack.c.bf16 %v1061_v43, %v1060_v42 }
 0x289   : > { %v1097_v47 = vpack.c.bf16 %v1059_v45, %v1058_v44  ;;  %v2092_v48 = vpop.f32.mrb[40].mxu1 }
 0x28a   : > { %v1016_v49 = vadd.f32 %v2092_v48, %v2889_v3  ;;  %v1007_v50 = vpop.f32.mrb[41].mxu1 }
 0x28b   : > { %v1008_v51 = vadd.f32 %v2889_v3, %v1007_v50  ;;  %v2093_v52 = vpop.f32.mrb[42].mxu1  ;;  %2134 = vmatprep.mubr.bf16.mxu0 %v1097_v47 }
 0x28c   : > { %v1019_v53 = vadd.f32 %v2093_v52, %v2889_v3  ;;  %v1010_v54 = vpop.f32.mrb[43].mxu1  ;;  %2135 = vmatmul.mubr.bf16.gmra.mrb[36].mxu0 %v1098_v46  ;;  %v1064_v56 = vmax.f32 %v1016_v49, 0.0 }
 0x28d   : > { %v1011_v55 = vadd.f32 %v2889_v3, %v1010_v54  ;;  %v1062_v58 = vmax.f32 %v1008_v51, 0.0 }
 0x28e   : > { %v1065_v57 = vmax.f32 %v1019_v53, 0.0 }
 0x28f   : > { %v1063_v59 = vmax.f32 %v1011_v55, 0.0 }
 0x290   : > { %v1100_v60 = vpack.c.bf16 %v1065_v57, %v1064_v56 }
 0x291   : > { %v1099_v61 = vpack.c.bf16 %v1063_v59, %v1062_v58  ;;  %v2096_v62 = vpop.f32.mrb[44].mxu1 }
 0x292   : > { %v1032_v63 = vadd.f32 %v2096_v62, %v2889_v3  ;;  %v1023_v1 = vpop.f32.mrb[45].mxu1 }
 0x293   : > { %v1024_v2 = vadd.f32 %v2889_v3, %v1023_v1  ;;  %v2097_v4 = vpop.f32.mrb[46].mxu1  ;;  %2138 = vmatprep.mubr.bf16.mxu0 %v1099_v61 }
 0x294   : > { %v1035_v5 = vadd.f32 %v2097_v4, %v2889_v3  ;;  %v1026_v6 = vpop.f32.mrb[47].mxu1  ;;  %2139 = vmatmul.mubr.bf16.gmra.mrb[40].mxu0 %v1100_v60  ;;  %v1068_v8 = vmax.f32 %v1032_v63, 0.0 }
 0x295   : > { %v1027_v7 = vadd.f32 %v2889_v3, %v1026_v6  ;;  %v1066_v10 = vmax.f32 %v1024_v2, 0.0 }
 0x296   : > { %v1069_v9 = vmax.f32 %v1035_v5, 0.0 }
 0x297   : > { %v1067_v11 = vmax.f32 %v1027_v7, 0.0 }
 0x298   : > { %v1102_v12 = vpack.c.bf16 %v1069_v9, %v1068_v8 }
 0x299   : > { %v1101_v13 = vpack.c.bf16 %v1067_v11, %v1066_v10 }
 0x29b   : > { %2142 = vmatprep.mubr.bf16.mxu0 %v1101_v13 }
 0x29c   : > { %2143 = vmatmul.mubr.bf16.gmra.mrb[44].mxu0 %v1102_v12 }
 0x337   : > { %v2116_v15 = vpop.f32.mrb[16].mxu0 }
 0x338   : > { %v1200_v16 = vadd.f32 %v2116_v15, %v2926_v14  ;;  %v1191_v17 = vpop.f32.mrb[17].mxu0 }
 0x339   : > { %v1192_v18 = vadd.f32 %v2926_v14, %v1191_v17  ;;  %v2117_v3 = vpop.f32.mrb[18].mxu0 }
 0x33a   : > { %2283 = vtanh.f32 %v1200_v16  ;;  %v1203_v19 = vadd.f32 %v2117_v3, %v2926_v14  ;;  %v1194_v20 = vpop.f32.mrb[19].mxu0 }
 0x33b   : > { %2285 = vtanh.f32 %v1192_v18  ;;  %v1195_v21 = vadd.f32 %v2926_v14, %v1194_v20 }
 0x33c   : > { %2287 = vtanh.f32 %v1203_v19 }
 0x33d   : > { %2289 = vtanh.f32 %v1195_v21 }
 0x33f   : > { %v2120_v22 = vpop.f32.mrb[20].mxu0 }
 0x340   : > { %v1216_v23 = vadd.f32 %v2120_v22, %v2926_v14  ;;  %v1207_v24 = vpop.f32.mrb[21].mxu0 }
 0x341   : > { %v1208_v25 = vadd.f32 %v2926_v14, %v1207_v24  ;;  %v2121_v38 = vpop.f32.mrb[22].mxu0 }
 0x342   : > { %2291 = vtanh.f32 %v1216_v23  ;;  %v1219_v0 = vadd.f32 %v2121_v38, %v2926_v14  ;;  %v1210_v27 = vpop.f32.mrb[23].mxu0 }
 0x343   : > { %2293 = vtanh.f32 %v1208_v25  ;;  %v1211_v29 = vadd.f32 %v2926_v14, %v1210_v27 }
 0x344   : > { %v2284_v28 = vpop.eup %2283  ;;  %2295 = vtanh.f32 %v1219_v0 }
 0x345   : > { %v2286_v30 = vpop.eup %2285  ;;  %v1359_v31 = vmul.f32 %v2284_v28, %v2937_v26  ;;  %2297 = vtanh.f32 %v1211_v29 }
 0x346   : > { %v2288_v32 = vpop.eup %2287  ;;  %v1357_v34 = vmul.f32 %v2286_v30, %v2937_v26 }
 0x347   : > { %v2290_v35 = vpop.eup %2289  ;;  %v1360_v36 = vmul.f32 %v2288_v32, %v2937_v26  ;;  %v2124_v37 = vpop.f32.mrb[24].mxu0  ;;  %v1398_v42 = vadd.f32 %v2945_v33, %v1359_v31 }
 0x348   : > { %v1358_v39 = vmul.f32 %v2290_v35, %v2937_v26  ;;  %v1232_v40 = vadd.f32 %v2124_v37, %v2926_v14  ;;  %v1223_v41 = vpop.f32.mrb[25].mxu0  ;;  %v1396_v46 = vadd.f32 %v2945_v33, %v1357_v34 }
 0x349   : > { %v1399_v43 = vadd.f32 %v2945_v33, %v1360_v36  ;;  %v1224_v44 = vadd.f32 %v2926_v14, %v1223_v41  ;;  %v2125_v45 = vpop.f32.mrb[26].mxu0 }
 0x34a   : > { %v1397_v47 = vadd.f32 %v2945_v33, %v1358_v39  ;;  %2299 = vtanh.f32 %v1232_v40  ;;  %v1235_v48 = vadd.f32 %v2125_v45, %v2926_v14  ;;  %v1226_v49 = vpop.f32.mrb[27].mxu0 }
 0x34b   : > { %v1843_v50 = vpack.c.bf16 %v1399_v43, %v1398_v42  ;;  %2301 = vtanh.f32 %v1224_v44  ;;  %v1227_v51 = vadd.f32 %v2926_v14, %v1226_v49 }
 0x34c   : > { %v2292_v52 = vpop.eup %2291  ;;  %v1838_v53 = vpack.c.bf16 %v1397_v47, %v1396_v46  ;;  %2303 = vtanh.f32 %v1235_v48 }
 0x34d   : > { %v2294_v54 = vpop.eup %2293  ;;  %1915 = vst [vmem:[%s2960_s21 + $0x8] sm:$0xff] %v1843_v50   ;;  %v1363_v55 = vmul.f32 %v2292_v52, %v2937_v26  ;;  %2305 = vtanh.f32 %v1227_v51 }
 0x34e   : > { %v2296_v56 = vpop.eup %2295  ;;  %1839 = vst [vmem:[%s2960_s21] sm:$0xff] %v1838_v53   ;;  %v1361_v57 = vmul.f32 %v2294_v54, %v2937_v26 }
 0x34f   : > { %v2298_v58 = vpop.eup %2297  ;;  %v1364_v59 = vmul.f32 %v2296_v56, %v2937_v26  ;;  %v2128_v60 = vpop.f32.mrb[28].mxu0  ;;  %v1402_v1 = vadd.f32 %v2945_v33, %v1363_v55 }
 0x350   : > { %v1362_v61 = vmul.f32 %v2298_v58, %v2937_v26  ;;  %v1248_v62 = vadd.f32 %v2128_v60, %v2926_v14  ;;  %v1239_v63 = vpop.f32.mrb[29].mxu0  ;;  %v1400_v6 = vadd.f32 %v2945_v33, %v1361_v57 }
 0x351   : > { %v1403_v2 = vadd.f32 %v2945_v33, %v1364_v59  ;;  %v1240_v4 = vadd.f32 %v2926_v14, %v1239_v63  ;;  %v2129_v5 = vpop.f32.mrb[30].mxu0 }
 0x352   : > { %v1401_v7 = vadd.f32 %v2945_v33, %v1362_v61  ;;  %2307 = vtanh.f32 %v1248_v62  ;;  %v1251_v8 = vadd.f32 %v2129_v5, %v2926_v14  ;;  %v1242_v9 = vpop.f32.mrb[31].mxu0 }
 0x353   : > { %v1853_v10 = vpack.c.bf16 %v1403_v2, %v1402_v1  ;;  %2309 = vtanh.f32 %v1240_v4  ;;  %v1243_v11 = vadd.f32 %v2926_v14, %v1242_v9 }
 0x354   : > { %v2300_v12 = vpop.eup %2299  ;;  %v1848_v13 = vpack.c.bf16 %v1401_v7, %v1400_v6  ;;  %2311 = vtanh.f32 %v1251_v8 }
 0x355   : > { %v2302_v15 = vpop.eup %2301  ;;  %1917 = vst [vmem:[%s2960_s21 + $0x18] sm:$0xff] %v1853_v10   ;;  %v1367_v16 = vmul.f32 %v2300_v12, %v2937_v26  ;;  %2313 = vtanh.f32 %v1243_v11 }
 0x356   : > { %v2304_v17 = vpop.eup %2303  ;;  %1916 = vst [vmem:[%s2960_s21 + $0x10] sm:$0xff] %v1848_v13   ;;  %v1365_v18 = vmul.f32 %v2302_v15, %v2937_v26 }
 0x357   : > { %v2306_v3 = vpop.eup %2305  ;;  %v1368_v19 = vmul.f32 %v2304_v17, %v2937_v26  ;;  %v2132_v20 = vpop.f32.mrb[32].mxu0  ;;  %v1406_v24 = vadd.f32 %v2945_v33, %v1367_v16 }
 0x358   : > { %v1366_v21 = vmul.f32 %v2306_v3, %v2937_v26  ;;  %v1264_v22 = vadd.f32 %v2132_v20, %v2926_v14  ;;  %v1255_v23 = vpop.f32.mrb[33].mxu0  ;;  %v1404_v27 = vadd.f32 %v2945_v33, %v1365_v18 }
 0x359   : > { %v1407_v25 = vadd.f32 %v2945_v33, %v1368_v19  ;;  %v1256_v38 = vadd.f32 %v2926_v14, %v1255_v23  ;;  %v2133_v0 = vpop.f32.mrb[34].mxu0 }
 0x35a   : > { %v1405_v29 = vadd.f32 %v2945_v33, %v1366_v21  ;;  %2315 = vtanh.f32 %v1264_v22  ;;  %v1267_v28 = vadd.f32 %v2133_v0, %v2926_v14  ;;  %v1258_v30 = vpop.f32.mrb[35].mxu0 }
 0x35b   : > { %v1863_v31 = vpack.c.bf16 %v1407_v25, %v1406_v24  ;;  %2317 = vtanh.f32 %v1256_v38  ;;  %v1259_v32 = vadd.f32 %v2926_v14, %v1258_v30 }
 0x35c   : > { %v2308_v34 = vpop.eup %2307  ;;  %v1858_v35 = vpack.c.bf16 %v1405_v29, %v1404_v27  ;;  %2319 = vtanh.f32 %v1267_v28 }
 0x35d   : > { %v2310_v36 = vpop.eup %2309  ;;  %1919 = vst [vmem:[%s2960_s21 + $0x28] sm:$0xff] %v1863_v31   ;;  %v1371_v37 = vmul.f32 %v2308_v34, %v2937_v26  ;;  %2321 = vtanh.f32 %v1259_v32 }
 0x35e   : > { %v2312_v39 = vpop.eup %2311  ;;  %1918 = vst [vmem:[%s2960_s21 + $0x20] sm:$0xff] %v1858_v35   ;;  %v1369_v40 = vmul.f32 %v2310_v36, %v2937_v26 }
 0x35f   : > { %v2314_v41 = vpop.eup %2313  ;;  %v1372_v42 = vmul.f32 %v2312_v39, %v2937_v26  ;;  %v2136_v43 = vpop.f32.mrb[36].mxu0  ;;  %v1410_v47 = vadd.f32 %v2945_v33, %v1371_v37 }
 0x360   : > { %v1370_v44 = vmul.f32 %v2314_v41, %v2937_v26  ;;  %v1280_v45 = vadd.f32 %v2136_v43, %v2926_v14  ;;  %v1271_v46 = vpop.f32.mrb[37].mxu0  ;;  %v1408_v51 = vadd.f32 %v2945_v33, %v1369_v40 }
 0x361   : > { %v1411_v48 = vadd.f32 %v2945_v33, %v1372_v42  ;;  %v1272_v49 = vadd.f32 %v2926_v14, %v1271_v46  ;;  %v2137_v50 = vpop.f32.mrb[38].mxu0 }
 0x362   : > { %v1409_v52 = vadd.f32 %v2945_v33, %v1370_v44  ;;  %2323 = vtanh.f32 %v1280_v45  ;;  %v1283_v53 = vadd.f32 %v2137_v50, %v2926_v14  ;;  %v1274_v54 = vpop.f32.mrb[39].mxu0 }
 0x363   : > { %v1873_v55 = vpack.c.bf16 %v1411_v48, %v1410_v47  ;;  %2325 = vtanh.f32 %v1272_v49  ;;  %v1275_v56 = vadd.f32 %v2926_v14, %v1274_v54 }
 0x364   : > { %v2316_v57 = vpop.eup %2315  ;;  %v1868_v58 = vpack.c.bf16 %v1409_v52, %v1408_v51  ;;  %2327 = vtanh.f32 %v1283_v53 }
 0x365   : > { %v2318_v59 = vpop.eup %2317  ;;  %1921 = vst [vmem:[%s2960_s21 + $0x38] sm:$0xff] %v1873_v55   ;;  %v1375_v60 = vmul.f32 %v2316_v57, %v2937_v26  ;;  %2329 = vtanh.f32 %v1275_v56 }
 0x366   : > { %v2320_v61 = vpop.eup %2319  ;;  %1920 = vst [vmem:[%s2960_s21 + $0x30] sm:$0xff] %v1868_v58   ;;  %v1373_v62 = vmul.f32 %v2318_v59, %v2937_v26 }
 0x367   : > { %v2322_v63 = vpop.eup %2321  ;;  %v1376_v1 = vmul.f32 %v2320_v61, %v2937_v26  ;;  %v2140_v2 = vpop.f32.mrb[40].mxu0  ;;  %v1414_v7 = vadd.f32 %v2945_v33, %v1375_v60 }
 0x368   : > { %v1374_v4 = vmul.f32 %v2322_v63, %v2937_v26  ;;  %v1296_v5 = vadd.f32 %v2140_v2, %v2926_v14  ;;  %v1287_v6 = vpop.f32.mrb[41].mxu0  ;;  %v1412_v11 = vadd.f32 %v2945_v33, %v1373_v62 }
 0x369   : > { %v1415_v8 = vadd.f32 %v2945_v33, %v1376_v1  ;;  %v1288_v9 = vadd.f32 %v2926_v14, %v1287_v6  ;;  %v2141_v10 = vpop.f32.mrb[42].mxu0 }
 0x36a   : > { %v1413_v12 = vadd.f32 %v2945_v33, %v1374_v4  ;;  %2331 = vtanh.f32 %v1296_v5  ;;  %v1299_v13 = vadd.f32 %v2141_v10, %v2926_v14  ;;  %v1290_v15 = vpop.f32.mrb[43].mxu0 }
 0x36b   : > { %v1883_v16 = vpack.c.bf16 %v1415_v8, %v1414_v7  ;;  %2333 = vtanh.f32 %v1288_v9  ;;  %v1291_v17 = vadd.f32 %v2926_v14, %v1290_v15 }
 0x36c   : > { %v2324_v18 = vpop.eup %2323  ;;  %v1878_v3 = vpack.c.bf16 %v1413_v12, %v1412_v11  ;;  %2335 = vtanh.f32 %v1299_v13 }
 0x36d   : > { %v2326_v19 = vpop.eup %2325  ;;  %1923 = vst [vmem:[%s2960_s21 + $0x48] sm:$0xff] %v1883_v16   ;;  %v1379_v20 = vmul.f32 %v2324_v18, %v2937_v26  ;;  %2337 = vtanh.f32 %v1291_v17 }
 0x36e   : > { %v2328_v21 = vpop.eup %2327  ;;  %1922 = vst [vmem:[%s2960_s21 + $0x40] sm:$0xff] %v1878_v3   ;;  %v1377_v22 = vmul.f32 %v2326_v19, %v2937_v26 }
 0x36f   : > { %v2330_v23 = vpop.eup %2329  ;;  %v1380_v24 = vmul.f32 %v2328_v21, %v2937_v26  ;;  %v2144_v25 = vpop.f32.mrb[44].mxu0  ;;  %v1418_v29 = vadd.f32 %v2945_v33, %v1379_v20 }
 0x370   : > { %v1378_v38 = vmul.f32 %v2330_v23, %v2937_v26  ;;  %v1312_v0 = vadd.f32 %v2144_v25, %v2926_v14  ;;  %v1303_v27 = vpop.f32.mrb[45].mxu0  ;;  %v1416_v32 = vadd.f32 %v2945_v33, %v1377_v22 }
 0x371   : > { %v1419_v28 = vadd.f32 %v2945_v33, %v1380_v24  ;;  %v1304_v30 = vadd.f32 %v2926_v14, %v1303_v27  ;;  %v2145_v31 = vpop.f32.mrb[46].mxu0 }
 0x372   : > { %v1417_v34 = vadd.f32 %v2945_v33, %v1378_v38  ;;  %2339 = vtanh.f32 %v1312_v0  ;;  %v1315_v35 = vadd.f32 %v2145_v31, %v2926_v14  ;;  %v1306_v36 = vpop.f32.mrb[47].mxu0 }
 0x373   : > { %v1893_v37 = vpack.c.bf16 %v1419_v28, %v1418_v29  ;;  %2341 = vtanh.f32 %v1304_v30  ;;  %v1307_v39 = vadd.f32 %v2926_v14, %v1306_v36 }
 0x374   : > { %v2332_v40 = vpop.eup %2331  ;;  %v1888_v41 = vpack.c.bf16 %v1417_v34, %v1416_v32  ;;  %2343 = vtanh.f32 %v1315_v35 }
 0x375   : > { %v2334_v42 = vpop.eup %2333  ;;  %1925 = vst [vmem:[%s2960_s21 + $0x58] sm:$0xff] %v1893_v37   ;;  %v1383_v43 = vmul.f32 %v2332_v40, %v2937_v26  ;;  %2345 = vtanh.f32 %v1307_v39 }
 0x376   : > { %v2336_v44 = vpop.eup %2335  ;;  %1924 = vst [vmem:[%s2960_s21 + $0x50] sm:$0xff] %v1888_v41   ;;  %v1381_v45 = vmul.f32 %v2334_v42, %v2937_v26 }
 0x377   : > { %v2338_v46 = vpop.eup %2337  ;;  %v1384_v47 = vmul.f32 %v2336_v44, %v2937_v26  ;;  %v1422_v14 = vadd.f32 %v2945_v33, %v1383_v43 }
 0x378   : > { %v1382_v48 = vmul.f32 %v2338_v46, %v2937_v26  ;;  %v1420_v50 = vadd.f32 %v2945_v33, %v1381_v45 }
 0x379   : > { %v1423_v49 = vadd.f32 %v2945_v33, %v1384_v47 }
 0x37a   : > { %v1421_v51 = vadd.f32 %v2945_v33, %v1382_v48 }
 0x37b   : > { %v1903_v52 = vpack.c.bf16 %v1423_v49, %v1422_v14 }
 0x37c   : > { %v2340_v53 = vpop.eup %2339  ;;  %v1898_v54 = vpack.c.bf16 %v1421_v51, %v1420_v50 }
 0x37d   : > { %v2342_v55 = vpop.eup %2341  ;;  %1927 = vst [vmem:[%s2960_s21 + $0x68] sm:$0xff] %v1903_v52   ;;  %v1387_v56 = vmul.f32 %v2340_v53, %v2937_v26 }
 0x37e   : > { %v2344_v57 = vpop.eup %2343  ;;  %1926 = vst [vmem:[%s2960_s21 + $0x60] sm:$0xff] %v1898_v54   ;;  %v1385_v58 = vmul.f32 %v2342_v55, %v2937_v26 }
 0x37f   : > { %v2346_v59 = vpop.eup %2345  ;;  %v1388_v60 = vmul.f32 %v2344_v57, %v2937_v26  ;;  %v1426_v62 = vadd.f32 %v2945_v33, %v1387_v56 }
 0x380   : > { %v1386_v61 = vmul.f32 %v2346_v59, %v2937_v26  ;;  %v1424_v1 = vadd.f32 %v2945_v33, %v1385_v58 }
 0x381   : > { %v1427_v63 = vadd.f32 %v2945_v33, %v1388_v60 }
 0x382   : > { %v1425_v2 = vadd.f32 %v2945_v33, %v1386_v61 }
 0x383   : > { %v1913_v4 = vpack.c.bf16 %v1427_v63, %v1426_v62 }
 0x384   : > { %v1908_v26 = vpack.c.bf16 %v1425_v2, %v1424_v1 }
 0x385   : > { %1929 = vst [vmem:[%s2960_s21 + $0x78] sm:$0xff] %v1913_v4  }
 0x386   : > { %1928 = vst [vmem:[%s2960_s21 + $0x70] sm:$0xff] %v1908_v26  }
 0x387   : > { %2474 = shalt.err (!%p2471_p4)
}
 0x388   : > { %s2475_s28 = scalar_lea.hbm %s3057_s25, 2048  ;;  %s2479_s21 = scalar_lea.hbm %s3138_s17, 4096 }
 0x389   : > { %p2476_p9 = scmp.ne.s32.totalorder %s3057_s25, %s2475_s28  ;;  %p2480_p8 = scmp.lt.u32.totalorder %s3057_s25, %s3138_s17 }
 0x38a   : > { %p2481_p13 = scmp.lt.u32.totalorder %s2479_s21, %s2475_s28  ;;  %p2483_p10 = scmp.lt.u32.totalorder %s2475_s28, %s3057_s25 }
 0x38b   : > { %p2477_p0 = pnand %p2476_p9, %p2750_p5 }
 0x38c   : > { %p2482_p6 = por %p2481_p13, %p2480_p8 }
 0x38d   : > { %p2478_p11 = pneg %p2477_p0 }
 0x38e   : > { %p2484_p3 = por %p2483_p10, %p2482_p6 }
 0x390   : > { %p2485_p7 = pnand %p2484_p3, %p2478_p11 }
 0x392   : > { %2488 = shalt.err (!%p2485_p7)
}
 0x393   : > { %s2544_s15 = smov 64   ;;  %s2545_s26 = smov 4  }
 0x394   : > { %2176 = dma.vmem_to_hbm [thread:$0]  (%p2750_p5), %s3059_s19, 2048, %s3057_s25, %s1589_s13, %s2544_s15, %s2544_s15, %s2545_s26  }
 0x395 PF: > { %s3139_s23 = sld [smem:[#allocation15_spill]]  ;;  %s3140_s22 = sld [smem:[#allocation16_spill]] }
 0x396   : > { %p3142_p1 = scmp.ge.s32.totalorder %s2535_s12, 2 }
 0x39b   : > { %s1617_s20 = sand.u32 1, %s3139_s23   ;;  %p3141_p12 = scmp.ne.s32.totalorder %s3140_s22, 0 }
 0x39c   : > { %s1618_s28 = scalar_lea.sflag [#allocation4], %s1617_s20 }
 0x39d   : > { %p2193_p2 = pnand %p3142_p1, %p3141_p12 }
 0x39f   : > { %2518 = dma.done.wait (!%p2193_p2), %s1618_s28, 2048  }
 0x3a0   : > { %2520 = vsyncadd (!%p2193_p2), %s1618_s28, 4294965248  ;;  %p24_p4 = scmp.ge.s32.totalorder %s2736_s14, 4   ;;  %s3143_s30 = smov %s2527_s10 }
 0x3a1   : > { %s3144_s10 = smov %s2531_s11  ;;  %s3145_s11 = smov %s2746_s16 }
 0x3a2   : > { %s3146_s12 = smov %s2736_s14  ;;  %26 = sbr.rel (!%p24_p4) target bundleno = 9 (0x9), region = 113 }
 0x3a9   :  { %1623 = vsyncpa [#allocation3], 1 }
 0x3aa   :  { %1625 = vsyncpa [#allocation3 + $0x1], 1 }
 0x3ab   :  { %1626 = vsyncpa [#allocation6], 1 }
 0x3ac   :  { %1627 = vsyncpa [#allocation9], 1 }
 0x3ad   :  { %1628 = vsyncpa [#allocation4], 1 }
 0x3ae   :  { %1630 = vsyncpa [#allocation4 + $0x1], 1 }

// kernel: tpu_custom_call.1
= control target key start
LH: loop header
LB: loop body
LE: loop exit
PB: predicated region body
PF: predicated region fallthrough
CT: control target
= control target key end

     0   :  { %s3105_s0 = inlined_call_operand.hbm [shape: bf16[512,128], index: 0, kind: input, shape index: {}]   ;;  %s3106_s1 = inlined_call_operand.vmem [shape: f32[1,128], index: 1, kind: input, shape index: {}]   ;;  %s3107_s2 = inlined_call_operand.vmem [shape: f32[1,128], index: 2, kind: input, shape index: {}]   ;;  %s3108_s3 = inlined_call_operand.hbm [shape: bf16[128,128], index: 3, kind: input, shape index: {}]   ;;  %s3109_s4 = inlined_call_operand.vmem [shape: f32[1,128], index: 4, kind: input, shape index: {}]   ;;  %s3110_s5 = inlined_call_operand.hbm [shape: bf16[128,128], index: 5, kind: input, shape index: {}]   ;;  %s3111_s6 = inlined_call_operand.vmem [shape: f32[1,128], index: 6, kind: input, shape index: {}]   ;;  %s3112_s7 = inlined_call_operand.hbm [shape: bf16[128,128], index: 7, kind: input, shape index: {}]   ;;  %s3113_s8 = inlined_call_operand.vmem [shape: f32[1,128], index: 8, kind: input, shape index: {}]   ;;  %s3114_s9 = inlined_call_operand.hbm [shape: bf16[512,128], index: 9, kind: output, shape index: {}]  }
   0x1   :  { %3121 = sst [smem:[#allocation17_spill]] %s3114_s9 }
   0x2   :  { %14 = vsyncpa [#allocation3], 0 }
   0x3   :  { %16 = vsyncpa [#allocation3 + $0x1], 0 }
   0x4   :  { %17 = vsyncpa [#allocation6], 0 }
   0x5   :  { %18 = vsyncpa [#allocation9], 0 }
   0x6   :  { %19 = vsyncpa [#allocation4], 0 }
   0x7   :  { %21 = vsyncpa [#allocation4 + $0x1], 0  ;;  %s2596_s30 = smov 0   ;;  %s2598_s10 = smov 0  }
   0x8   :  { %s2600_s11 = smov 0   ;;  %s2602_s12 = smov 0  }
   0x9 LB: > { %3122 = sst [smem:[#allocation15_spill]] %s2523_s30  ;;  %s2617_s13 = sadd.s32 4294967295, %s2535_s12   ;;  %s2535_s12 = sphi %s2602_s12, %s3146_s12   ;;  %s2531_s11 = sphi %s2600_s11, %s3145_s11   ;;  %s2527_s10 = sphi %s2598_s10, %s3144_s10   ;;  %s2523_s30 = sphi %s2596_s30, %s3143_s30  }
   0xa   : > { %s1704_s14 = sadd.s32 4294967294, %s2535_s12   ;;  %p47_p0 = scmp.ne.s32.totalorder %s2527_s10, %s2523_s30 }
   0xb   : > { %p3115_p1 = scmp.eq.s32.totalorder %s2617_s13, 0  ;;  %p245_p3 = scmp.eq.s32.totalorder %s1704_s14, 1 }
   0xc   : > { %p1705_p5 = scmp.ge.s32.totalorder %s2535_s12, 1  ;;  %p252_p7 = scmp.lt.s32.totalorder %s2535_s12, 3 }
   0xd   : > { %p2626_p4 = por %p3115_p1, %p47_p0  ;;  %p2631_p6 = por %p245_p3, %p47_p0 }
   0xe   : > { %p2636_p8 = pnand %p1705_p5, %p252_p7  ;;  %s2537_s18 = smov [#allocation5]  }
   0xf   : > { %s3123_s15 = scalar_select %p2626_p4, 1, 0 }
  0x10   : > { %s3124_s16 = scalar_select %p2631_p6, 1, 0 }
  0x11   : > { %s3126_s17 = scalar_select %p2636_p8, 1, 0 }
  0x12   : > { %3125 = sst [smem:[#allocation16_spill]] %s3124_s16  ;;  %s270_s19 = sshll.u32 %s2537_s18, 4  ;;  %s2640_s19 = int_to_ptr.vmem [resolvable:$true] %s270_s19 }
  0x13   : > { %p2178_p9 = pneg %p2636_p8  ;;  %s2538_s21 = smov [#allocation7]  }
  0x14   : > { %s286_s22 = sshll.u32 %s2538_s21, 4  ;;  %s2539_s23 = smov [#allocation8]   ;;  %s2651_s22 = int_to_ptr.vmem [resolvable:$true] %s286_s22 }
  0x15   : > { %p2647_p11 = pnand %p2178_p9, %p3115_p1  ;;  %s2653_s24 = sshll.u32 %s2539_s23, 4  ;;  %s303_s24 = int_to_ptr.vmem [resolvable:$true] %s2653_s24 }
  0x16   : > { %s2347_s27 = scalar_lea.hbm %s3108_s3, 1024 }
  0x17   : > { %p2348_p12 = scmp.ne.s32.totalorder %s3108_s3, %s2347_s27  ;;  %p2663_p13 = pneg %p2647_p11 }
  0x18   : > { %p2354_p5 = scmp.lt.u32.totalorder %s2347_s27, %s3108_s3 }
  0x19   : > { %p2350_p0 = pnand %p2663_p13, %p2348_p12 }
  0x1b   : > { %p2351_p3 = pneg %p2350_p0 }
  0x1d   : > { %p2356_p7 = pnand %p2354_p5, %p2351_p3 }
  0x1f   : > { %2359 = shalt.err (!%p2356_p7)
}
  0x20   : > { %s2360_s23 = scalar_lea.vmem %s2640_s19, 1024  ;;  %p2368_p2 = scmp.lt.s32.totalorder %s2640_s19, %s2640_s19 }
  0x21   : > { %p2361_p9 = scmp.ne.s32.totalorder %s2640_s19, %s2360_s23  ;;  %p2369_p6 = scmp.lt.s32.totalorder %s2360_s23, %s2360_s23 }
  0x23   : > { %p2363_p10 = pnand %p2361_p9, %p2663_p13  ;;  %p2370_p12 = por %p2369_p6, %p2368_p2 }
  0x25   : > { %p2364_p1 = pneg %p2363_p10 }
  0x27   : > { %p2371_p0 = pnand %p2370_p12, %p2364_p1 }
  0x29   : > { %2374 = shalt.err (!%p2371_p0)
}
  0x2a   : > { %s2540_s25 = smov 64   ;;  %s2541_s26 = smov 4  }
  0x2b   : > { %2181 = dma.hbm_to_vmem [thread:$0]  (!%p2647_p11), %s3108_s3, 1024, %s2640_s19, [#allocation6], %s2540_s25, %s2540_s25, %s2541_s26  }
  0x2c   : > { %s2375_s21 = scalar_lea.hbm %s3110_s5, 1024 }
  0x2d   : > { %p2376_p1 = scmp.ne.s32.totalorder %s3110_s5, %s2375_s21  ;;  %p2382_p10 = scmp.lt.u32.totalorder %s2375_s21, %s3110_s5 }
  0x2f   : > { %p2378_p2 = pnand %p2376_p1, %p2663_p13 }
  0x31   : > { %p2379_p6 = pneg %p2378_p2 }
  0x33   : > { %p2384_p3 = pnand %p2382_p10, %p2379_p6 }
  0x35   : > { %2387 = shalt.err (!%p2384_p3)
}
  0x36   : > { %s2388_s19 = scalar_lea.vmem %s2651_s22, 1024  ;;  %p2396_p12 = scmp.lt.s32.totalorder %s2651_s22, %s2651_s22 }
  0x37   : > { %p2389_p5 = scmp.ne.s32.totalorder %s2651_s22, %s2388_s19  ;;  %p2397_p0 = scmp.lt.s32.totalorder %s2388_s19, %s2388_s19 }
  0x39   : > { %p2391_p7 = pnand %p2389_p5, %p2663_p13  ;;  %p2398_p1 = por %p2397_p0, %p2396_p12 }
  0x3b   : > { %p2392_p9 = pneg %p2391_p7 }
  0x3d   : > { %p2399_p2 = pnand %p2398_p1, %p2392_p9 }
  0x3f   : > { %2402 = shalt.err (!%p2399_p2)
}
  0x40   : > { %2184 = dma.hbm_to_vmem [thread:$0]  (!%p2647_p11), %s3110_s5, 1024, %s2651_s22, [#allocation6], %s2540_s25, %s2540_s25, %s2541_s26  }
  0x41   : > { %s2403_s28 = scalar_lea.hbm %s3112_s7, 1024 }
  0x42   : > { %p2404_p6 = scmp.ne.s32.totalorder %s3112_s7, %s2403_s28  ;;  %p2410_p5 = scmp.lt.u32.totalorder %s2403_s28, %s3112_s7 }
  0x44   : > { %p2406_p10 = pnand %p2404_p6, %p2663_p13 }
  0x46   : > { %p2407_p3 = pneg %p2406_p10 }
  0x48   : > { %p2412_p7 = pnand %p2410_p5, %p2407_p3 }
  0x4a   : > { %2415 = shalt.err (!%p2412_p7)
}
  0x4b   : > { %s2416_s19 = scalar_lea.vmem %s303_s24, 1024  ;;  %p2424_p1 = scmp.lt.s32.totalorder %s303_s24, %s303_s24 }
  0x4c   : > { %p2417_p9 = scmp.ne.s32.totalorder %s303_s24, %s2416_s19  ;;  %p2425_p2 = scmp.lt.s32.totalorder %s2416_s19, %s2416_s19 }
  0x4e   : > { %p2419_p12 = pnand %p2417_p9, %p2663_p13  ;;  %p2426_p4 = por %p2425_p2, %p2424_p1 }
  0x50   : > { %p2420_p0 = pneg %p2419_p12 }
  0x52   : > { %p2427_p8 = pnand %p2426_p4, %p2420_p0 }
  0x54   : > { %2430 = shalt.err (!%p2427_p8)
}
  0x55   : > { %2187 = dma.hbm_to_vmem [thread:$0]  (!%p2647_p11), %s3112_s7, 1024, %s303_s24, [#allocation9], %s2540_s25, %s2540_s25, %s2541_s26  }
  0x56   : > { %s2736_s14 = sadd.s32 1, %s2535_s12   ;;  %s34_s30 = sadd.s32 1, %s2531_s11 }
  0x57   : > { %s31_s20 = ssub.s32 %s2535_s12, %s2736_s14  ;;  %p41_p8 = scmp.ne.s32.totalorder %s2531_s11, %s2527_s10 }
  0x58   : > { %p32_p4 = scmp.eq.s32.totalorder %s31_s20, 0  ;;  %p42_p13 = scmp.eq.s32.totalorder %s2535_s12, 0 }
  0x59   : > { %p2199_p6 = scmp.lt.s32.totalorder %s2535_s12, 2  ;;  %p3129_p3 = scmp.eq.s32.totalorder %s2617_s13, 1 }
  0x5a   : > { %s2746_s16 = scalar_select %p32_p4, %s2531_s11, %s34_s30  }
  0x5b   : > { %p43_p10 = por %p42_p13, %p41_p8  ;;  %p2750_p5 = por %p3129_p3, %p41_p8 }
  0x5c   : > { %s319_s28 = sand.u32 1, %s2531_s11   ;;  %s1801_s29 = sshll.u32 %s2535_s12, 11 }
  0x5d   : > { %s1710_s24 = sshll.u32 %s319_s28, 7  ;;  %s2759_s23 = scalar_lea.hbm %s3105_s0, %s1801_s29 }
  0x5e   : > { %s323_s19 = scalar_lea.vmem [#allocation2], %s1710_s24  ;;  %p2761_p11 = pnand %p2199_p6, %p43_p10 }
  0x5f   : > { %s330_s22 = sshll.u32 %s323_s19, 4  ;;  %s2767_s20 = scalar_lea.sflag [#allocation3], %s319_s28  ;;  %s2765_s22 = int_to_ptr.vmem [resolvable:$true] %s330_s22 }
  0x60   : > { %s2431_s30 = scalar_lea.hbm %s2759_s23, 2048  ;;  %p2433_p9 = pneg %p2761_p11 }
  0x61   : > { %p2432_p7 = scmp.ne.s32.totalorder %s2759_s23, %s2431_s30  ;;  %s2436_s18 = scalar_lea.hbm %s3105_s0, 4096 }
  0x62   : > { %p2437_p1 = scmp.lt.u32.totalorder %s2759_s23, %s3105_s0  ;;  %p2438_p2 = scmp.lt.u32.totalorder %s2436_s18, %s2431_s30 }
  0x63   : > { %p2434_p12 = pnand %p2433_p9, %p2432_p7  ;;  %p2440_p8 = scmp.lt.u32.totalorder %s2431_s30, %s2759_s23 }
  0x64   : > { %p2439_p4 = por %p2438_p2, %p2437_p1 }
  0x65   : > { %p2435_p0 = pneg %p2434_p12 }
  0x66   : > { %p2441_p13 = por %p2440_p8, %p2439_p4 }
  0x68   : > { %p2442_p6 = pnand %p2441_p13, %p2435_p0 }
  0x6a   : > { %2445 = shalt.err (!%p2442_p6)
}
  0x6b   : > { %s2446_s28 = scalar_lea.vmem %s2765_s22, 2048  ;;  %s2542_s29 = smov [#allocation2]  }
  0x6c   : > { %p2447_p10 = scmp.ne.s32.totalorder %s2765_s22, %s2446_s28  ;;  %s2451_s24 = sshll.u32 %s2542_s29, 4  ;;  %s2452_s24 = int_to_ptr.vmem [resolvable:$false] %s2451_s24 }
  0x6d   : > { %s2453_s21 = scalar_lea.vmem %s2452_s24, 4096  ;;  %p2454_p12 = scmp.lt.s32.totalorder %s2765_s22, %s2452_s24 }
  0x6e   : > { %p2449_p3 = pnand %p2447_p10, %p2433_p9  ;;  %p2455_p1 = scmp.lt.s32.totalorder %s2453_s21, %s2446_s28 }
  0x70   : > { %p2450_p7 = pneg %p2449_p3  ;;  %p2456_p2 = por %p2455_p1, %p2454_p12 }
  0x72   : > { %p2457_p4 = pnand %p2456_p2, %p2450_p7 }
  0x74   : > { %2460 = shalt.err (!%p2457_p4)
}
  0x75   : > { %2191 = dma.hbm_to_vmem [thread:$0]  (!%p2761_p11), %s2759_s23, 2048, %s2765_s22, %s2767_s20, %s2540_s25, %s2540_s25, %s2541_s26  }
  0x76   : > { %p3132_p9 = scmp.ne.s32.totalorder %s3126_s17, 0 }
  0x77   : > { %s2801_s30 = sand.u32 (!%p3132_p9), 1, %s2527_s10   ;;  %p3133_p0 = scmp.ne.s32.totalorder (!%p3132_p9), %s3123_s15, 0 }
  0x78   : > { %342 = sbr.rel (%p3132_p9) target bundleno = 917 (0x395), region = 56  ;;  %s1714_s18 = sshll.u32 (!%p3132_p9), %s2801_s30, 7 }
  0x79   : > { %s345_s19 = scalar_lea.sflag (!%p3132_p9), [#allocation3], %s2801_s30  ;;  %s2807_s9 = scalar_lea.vmem (!%p3132_p9), [#allocation2], %s1714_s18 }
  0x7f   : > { %2506 = dma.done.wait (%p3133_p0), %s345_s19, 2048  }
  0x80   : > { %2508 = vsyncadd (%p3133_p0), %s345_s19, 4294965248  ;;  %p3134_p11 = scmp.eq.s32.totalorder %s2617_s13, 0 }
  0x82   : > { %2510 = dma.done.wait (%p3134_p11), [#allocation6], 2048   ;;  %p3135_p8 = pmov %p3134_p11 }
  0x84   : > { %2512 = vsyncadd (%p3135_p8), [#allocation6], 4294965248  ;;  %p3136_p13 = pmov %p3135_p8 }
  0x85   : > { %p3137_p6 = pmov %p3135_p8 }
  0x86   : > { %2514 = dma.done.wait (%p3136_p13), [#allocation9], 1024  }
  0x87   : > { %2516 = vsyncadd (%p3137_p6), [#allocation9], 4294966272  ;;  %v2243_v0 = vld [vmem:[#allocation5] sm:$0xff]   ;;  %v2244_v1 = vld [vmem:[#allocation5 + $0x8] sm:$0xff]   ;;  %s2960_s21 = scalar_lea.vmem [#allocation10], %s1714_s18  ;;  %s1834_s18 = sshll.u32 %s2617_s13, 11 }
  0x88   : > { %2002 = vmatprep.subr.bf16.mxu0 %v2243_v0  ;;  %2146 = vmatprep.subr.bf16.mxu1 %v2243_v0  ;;  %v2245_v2 = vld [vmem:[#allocation5 + $0x10] sm:$0xff]   ;;  %v2246_v3 = vld [vmem:[#allocation5 + $0x18] sm:$0xff]   ;;  %v2251_v4 = vld [vmem:[%s2807_s9] sm:$0xff]   ;;  %s1602_s19 = sshll.u32 %s2960_s21, 4  ;;  %s3138_s17 = sld [smem:[#allocation17_spill]]  ;;  %s3059_s19 = int_to_ptr.vmem [resolvable:$true] %s1602_s19 }
  0x89   : > { %2003 = vmatpush3.bf16.msra.mxu0 %v2243_v0  ;;  %2154 = vmatpush3.bf16.msra.mxu1 %v2243_v0  ;;  %v2247_v5 = vld [vmem:[#allocation5 + $0x20] sm:$0xff]   ;;  %v2248_v6 = vld [vmem:[#allocation5 + $0x28] sm:$0xff]   ;;  %v2249_v8 = vld [vmem:[#allocation5 + $0x30] sm:$0xff]   ;;  %s1589_s13 = scalar_lea.sflag [#allocation4], %s2801_s30  ;;  %s2461_s26 = scalar_lea.vmem %s3059_s19, 2048 }
  0x8a   : > { %2004 = vmatprep.subr.bf16.mxu0 %v2244_v1  ;;  %2147 = vmatprep.subr.bf16.mxu1 %v2244_v1  ;;  %v2259_v7 = vld [vmem:[%s2807_s9 + $0x40] sm:$0xff]   ;;  %v2250_v9 = vld [vmem:[#allocation5 + $0x38] sm:$0xff]   ;;  %v2252_v10 = vld [vmem:[%s2807_s9 + $0x8] sm:$0xff]   ;;  %p2462_p10 = scmp.ne.s32.totalorder %s3059_s19, %s2461_s26  ;;  %s2543_s23 = smov [#allocation10]  }
  0x8b   : > { %2018 = vmatprep.mubr.bf16.mxu0 %v2251_v4  ;;  %2034 = vmatprep.mubr.bf16.mxu1 %v2259_v7  ;;  %v2260_v11 = vld [vmem:[%s2807_s9 + $0x48] sm:$0xff]   ;;  %v2267_v12 = vld [vmem:[#allocation7] sm:$0xff]   ;;  %v2253_v13 = vld [vmem:[%s2807_s9 + $0x10] sm:$0xff]   ;;  %s2465_s22 = sshll.u32 %s2543_s23, 4  ;;  %s2466_s22 = int_to_ptr.vmem [resolvable:$false] %s2465_s22 }
  0x8c   : > { %v2261_v14 = vld [vmem:[%s2807_s9 + $0x50] sm:$0xff]   ;;  %v2268_v15 = vld [vmem:[#allocation7 + $0x8] sm:$0xff]   ;;  %v2254_v17 = vld [vmem:[%s2807_s9 + $0x18] sm:$0xff]   ;;  %p2463_p3 = pnand %p2462_p10, %p2750_p5  ;;  %s2467_s20 = scalar_lea.vmem %s2466_s22, 4096 }
  0x8d   : > { %2005 = vmatpush3.bf16.msra.mxu0 %v2244_v1  ;;  %2155 = vmatpush3.bf16.msra.mxu1 %v2244_v1  ;;  %v2269_v16 = vld [vmem:[#allocation7 + $0x10] sm:$0xff]   ;;  %v2262_v18 = vld [vmem:[%s2807_s9 + $0x58] sm:$0xff]   ;;  %v2255_v19 = vld [vmem:[%s2807_s9 + $0x20] sm:$0xff]   ;;  %p2468_p12 = scmp.lt.s32.totalorder %s3059_s19, %s2466_s22  ;;  %p2469_p1 = scmp.lt.s32.totalorder %s2467_s20, %s2461_s26 }
  0x8e   : > { %2006 = vmatprep.subr.bf16.mxu0 %v2245_v2  ;;  %2148 = vmatprep.subr.bf16.mxu1 %v2245_v2  ;;  %v2263_v20 = vld [vmem:[%s2807_s9 + $0x60] sm:$0xff]   ;;  %v2270_v21 = vld [vmem:[#allocation7 + $0x18] sm:$0xff]   ;;  %v2256_v23 = vld [vmem:[%s2807_s9 + $0x28] sm:$0xff]   ;;  %s3057_s25 = scalar_lea.hbm %s3138_s17, %s1834_s18  ;;  %p2464_p7 = pneg %p2463_p3 }
  0x8f   : > { %v2271_v22 = vld [vmem:[#allocation7 + $0x20] sm:$0xff]   ;;  %v2264_v24 = vld [vmem:[%s2807_s9 + $0x68] sm:$0xff]   ;;  %v2257_v25 = vld [vmem:[%s2807_s9 + $0x30] sm:$0xff]   ;;  %p2470_p2 = por %p2469_p1, %p2468_p12 }
  0x90   : > { %v2265_v26 = vld [vmem:[%s2807_s9 + $0x70] sm:$0xff]   ;;  %v2272_v27 = vld [vmem:[#allocation7 + $0x28] sm:$0xff]   ;;  %v2258_v28 = vld [vmem:[%s2807_s9 + $0x38] sm:$0xff]  }
  0x91   : > { %2007 = vmatpush3.bf16.msra.mxu0 %v2245_v2  ;;  %2156 = vmatpush3.bf16.msra.mxu1 %v2245_v2  ;;  %v2266_v29 = vld [vmem:[%s2807_s9 + $0x78] sm:$0xff]   ;;  %v2273_v30 = vld [vmem:[#allocation7 + $0x30] sm:$0xff]   ;;  %v2275_v32 = vld [vmem:[#allocation8] sm:$0xff]   ;;  %p2471_p4 = pnand %p2470_p2, %p2464_p7 }
  0x92   : > { %2008 = vmatprep.subr.bf16.mxu0 %v2246_v3  ;;  %2149 = vmatprep.subr.bf16.mxu1 %v2246_v3  ;;  %v2274_v31 = vld [vmem:[#allocation7 + $0x38] sm:$0xff]   ;;  %v2276_v33 = vld [vmem:[#allocation8 + $0x8] sm:$0xff]   ;;  %v2277_v34 = vld [vmem:[#allocation8 + $0x10] sm:$0xff]  }
  0x93   : > { %v2278_v35 = vld [vmem:[#allocation8 + $0x18] sm:$0xff]   ;;  %v2279_v36 = vld [vmem:[#allocation8 + $0x20] sm:$0xff]   ;;  %v2280_v37 = vld [vmem:[#allocation8 + $0x28] sm:$0xff]  }
  0x94   : > { %v2840_v38 = vld [vmem:[%s3109_s4] ss:$0 sm:$0xff] }
  0x95   : > { %2009 = vmatpush3.bf16.msra.mxu0 %v2246_v3  ;;  %2157 = vmatpush3.bf16.msra.mxu1 %v2246_v3 }
  0x96   : > { %2010 = vmatprep.subr.bf16.mxu0 %v2247_v5  ;;  %2150 = vmatprep.subr.bf16.mxu1 %v2247_v5 }
  0x99   : > { %2011 = vmatpush3.bf16.msra.mxu0 %v2247_v5  ;;  %2158 = vmatpush3.bf16.msra.mxu1 %v2247_v5 }
  0x9a   : > { %2012 = vmatprep.subr.bf16.mxu0 %v2248_v6  ;;  %2151 = vmatprep.subr.bf16.mxu1 %v2248_v6 }
  0x9d   : > { %2013 = vmatpush3.bf16.msra.mxu0 %v2248_v6  ;;  %2159 = vmatpush3.bf16.msra.mxu1 %v2248_v6 }
  0x9e   : > { %2014 = vmatprep.subr.bf16.mxu0 %v2249_v8  ;;  %2152 = vmatprep.subr.bf16.mxu1 %v2249_v8 }
  0xa1   : > { %2015 = vmatpush3.bf16.msra.mxu0 %v2249_v8  ;;  %2160 = vmatpush3.bf16.msra.mxu1 %v2249_v8 }
  0xa2   : > { %2016 = vmatprep.subr.bf16.mxu0 %v2250_v9  ;;  %2153 = vmatprep.subr.bf16.mxu1 %v2250_v9 }
  0xa5   : > { %2017 = vmatpush3.bf16.msra.mxu0 %v2250_v9  ;;  %2161 = vmatpush3.bf16.msra.mxu1 %v2250_v9 }
  0xa6   : > { %2050 = vmatprep.subr.bf16.mxu1 %v2267_v12  ;;  %2098 = vmatprep.subr.bf16.mxu0 %v2275_v32 }
  0xa8   : > { %2019 = vmatmul.mubr.bf16.vlgmr.msra.gmra.mrb[0].mxu0 %v2252_v10  ;;  %2035 = vmatmul.mubr.bf16.vlgmr.msra.gmra.mrb[0].mxu1 %v2260_v11 }
  0xa9   : > { %2022 = vmatprep.mubr.bf16.mxu0 %v2253_v13  ;;  %2038 = vmatprep.mubr.bf16.mxu1 %v2261_v14 }
  0xaa   : > { %2051 = vmatpush3.bf16.msra.mxu1 %v2267_v12  ;;  %2099 = vmatpush3.bf16.msra.mxu0 %v2275_v32 }
  0xab   : > { %2052 = vmatprep.subr.bf16.mxu1 %v2268_v15  ;;  %2100 = vmatprep.subr.bf16.mxu0 %v2276_v33 }
  0xae   : > { %2053 = vmatpush3.bf16.msra.mxu1 %v2268_v15  ;;  %2101 = vmatpush3.bf16.msra.mxu0 %v2276_v33 }
  0xaf   : > { %2054 = vmatprep.subr.bf16.mxu1 %v2269_v16  ;;  %2102 = vmatprep.subr.bf16.mxu0 %v2277_v34 }
  0xb0   : > { %2023 = vmatmul.mubr.bf16.gmra.mrb[4].mxu0 %v2254_v17  ;;  %2039 = vmatmul.mubr.bf16.gmra.mrb[4].mxu1 %v2262_v18 }
  0xb1   : > { %2026 = vmatprep.mubr.bf16.mxu0 %v2255_v19  ;;  %2042 = vmatprep.mubr.bf16.mxu1 %v2263_v20 }
  0xb2   : > { %2055 = vmatpush3.bf16.msra.mxu1 %v2269_v16  ;;  %2103 = vmatpush3.bf16.msra.mxu0 %v2277_v34 }
  0xb3   : > { %2056 = vmatprep.subr.bf16.mxu1 %v2270_v21  ;;  %2104 = vmatprep.subr.bf16.mxu0 %v2278_v35 }
  0xb6   : > { %2057 = vmatpush3.bf16.msra.mxu1 %v2270_v21  ;;  %2105 = vmatpush3.bf16.msra.mxu0 %v2278_v35 }
  0xb7   : > { %2058 = vmatprep.subr.bf16.mxu1 %v2271_v22  ;;  %2106 = vmatprep.subr.bf16.mxu0 %v2279_v36 }
  0xb8   : > { %2027 = vmatmul.mubr.bf16.gmra.mrb[8].mxu0 %v2256_v23  ;;  %2043 = vmatmul.mubr.bf16.gmra.mrb[8].mxu1 %v2264_v24 }
  0xb9   : > { %2030 = vmatprep.mubr.bf16.mxu0 %v2257_v25  ;;  %2046 = vmatprep.mubr.bf16.mxu1 %v2265_v26 }
  0xba   : > { %2059 = vmatpush3.bf16.msra.mxu1 %v2271_v22  ;;  %2107 = vmatpush3.bf16.msra.mxu0 %v2279_v36 }
  0xbb   : > { %2060 = vmatprep.subr.bf16.mxu1 %v2272_v27  ;;  %2108 = vmatprep.subr.bf16.mxu0 %v2280_v37 }
  0xbe   : > { %2061 = vmatpush3.bf16.msra.mxu1 %v2272_v27  ;;  %2109 = vmatpush3.bf16.msra.mxu0 %v2280_v37 }
  0xbf   : > { %2062 = vmatprep.subr.bf16.mxu1 %v2273_v30 }
  0xc0   : > { %2031 = vmatmul.mubr.bf16.gmra.mrb[12].mxu0 %v2258_v28  ;;  %2047 = vmatmul.mubr.bf16.gmra.mrb[12].mxu1 %v2266_v29 }
  0xc2   : > { %2063 = vmatpush3.bf16.msra.mxu1 %v2273_v30 }
  0xc3   : > { %2064 = vmatprep.subr.bf16.mxu1 %v2274_v31 }
  0xc6   : > { %2065 = vmatpush3.bf16.msra.mxu1 %v2274_v31 }
 0x17b   : > { %v2020_v39 = vpop.f32.mrb[0].mxu0  ;;  %v2036_v40 = vpop.f32.mrb[0].mxu1 }
 0x17c   : > { %v640_v41 = vadd.f32 %v2020_v39, %v2840_v38  ;;  %v631_v42 = vpop.f32.mrb[1].mxu0  ;;  %v704_v43 = vadd.f32 %v2036_v40, %v2840_v38  ;;  %v695_v44 = vpop.f32.mrb[1].mxu1 }
 0x17d   : > { %v632_v45 = vadd.f32 %v2840_v38, %v631_v42  ;;  %v2021_v46 = vpop.f32.mrb[2].mxu0  ;;  %v696_v47 = vadd.f32 %v2840_v38, %v695_v44  ;;  %v2037_v48 = vpop.f32.mrb[2].mxu1 }
 0x17e   : > { %v643_v49 = vadd.f32 %v2021_v46, %v2840_v38  ;;  %v634_v50 = vpop.f32.mrb[3].mxu0  ;;  %v776_v51 = vmax.f32 %v704_v43, 0.0  ;;  %v707_v52 = vadd.f32 %v2037_v48, %v2840_v38  ;;  %v698_v53 = vpop.f32.mrb[3].mxu1  ;;  %v760_v57 = vmax.f32 %v640_v41, 0.0 }
 0x17f   : > { %v635_v54 = vadd.f32 %v2840_v38, %v634_v50  ;;  %v774_v55 = vmax.f32 %v696_v47, 0.0  ;;  %v699_v56 = vadd.f32 %v2840_v38, %v698_v53  ;;  %v758_v60 = vmax.f32 %v632_v45, 0.0 }
 0x180   : > { %v761_v58 = vmax.f32 %v643_v49, 0.0  ;;  %v777_v59 = vmax.f32 %v707_v52, 0.0 }
 0x181   : > { %v759_v61 = vmax.f32 %v635_v54, 0.0  ;;  %v775_v62 = vmax.f32 %v699_v56, 0.0 }
 0x182   : > { %v808_v63 = vpack.c.bf16 %v761_v58, %v760_v57  ;;  %v2850_v0 = vpack.c.bf16 %v777_v59, %v776_v51 }
 0x183   : > { %v807_v1 = vpack.c.bf16 %v759_v61, %v758_v60  ;;  %v2024_v2 = vpop.f32.mrb[4].mxu0  ;;  %v2852_v3 = vpack.c.bf16 %v775_v62, %v774_v55  ;;  %v2040_v4 = vpop.f32.mrb[4].mxu1 }
 0x184   : > { %v656_v5 = vadd.f32 %v2024_v2, %v2840_v38  ;;  %v647_v6 = vpop.f32.mrb[5].mxu0  ;;  %v720_v7 = vadd.f32 %v2040_v4, %v2840_v38  ;;  %v711_v8 = vpop.f32.mrb[5].mxu1 }
 0x185   : > { %v648_v9 = vadd.f32 %v2840_v38, %v647_v6  ;;  %v2025_v10 = vpop.f32.mrb[6].mxu0  ;;  %2066 = vmatprep.mubr.bf16.mxu1 %v807_v1  ;;  %v712_v11 = vadd.f32 %v2840_v38, %v711_v8  ;;  %v2041_v12 = vpop.f32.mrb[6].mxu1 }
 0x186   : > { %v659_v13 = vadd.f32 %v2025_v10, %v2840_v38  ;;  %v650_v14 = vpop.f32.mrb[7].mxu0  ;;  %2067 = vmatmul.mubr.bf16.vlgmr.msra.gmra.mrb[16].mxu1 %v808_v63  ;;  %v780_v15 = vmax.f32 %v720_v7, 0.0  ;;  %v723_v16 = vadd.f32 %v2041_v12, %v2840_v38  ;;  %v714_v17 = vpop.f32.mrb[7].mxu1  ;;  %v764_v21 = vmax.f32 %v656_v5, 0.0 }
 0x187   : > { %v651_v18 = vadd.f32 %v2840_v38, %v650_v14  ;;  %v778_v19 = vmax.f32 %v712_v11, 0.0  ;;  %v715_v20 = vadd.f32 %v2840_v38, %v714_v17  ;;  %v762_v24 = vmax.f32 %v648_v9, 0.0 }
 0x188   : > { %v765_v22 = vmax.f32 %v659_v13, 0.0  ;;  %v781_v23 = vmax.f32 %v723_v16, 0.0 }
 0x189   : > { %v763_v25 = vmax.f32 %v651_v18, 0.0  ;;  %v779_v26 = vmax.f32 %v715_v20, 0.0 }
 0x18a   : > { %v810_v27 = vpack.c.bf16 %v765_v22, %v764_v21  ;;  %v2862_v28 = vpack.c.bf16 %v781_v23, %v780_v15 }
 0x18b   : > { %v809_v29 = vpack.c.bf16 %v763_v25, %v762_v24  ;;  %v2028_v30 = vpop.f32.mrb[8].mxu0  ;;  %v2864_v31 = vpack.c.bf16 %v779_v26, %v778_v19  ;;  %v2044_v32 = vpop.f32.mrb[8].mxu1  ;;  %v2282_v26 = vld [vmem:[#allocation8 + $0x38] sm:$0xff]  }
 0x18c   : > { %v672_v33 = vadd.f32 %v2028_v30, %v2840_v38  ;;  %v663_v34 = vpop.f32.mrb[9].mxu0  ;;  %v736_v35 = vadd.f32 %v2044_v32, %v2840_v38  ;;  %v727_v36 = vpop.f32.mrb[9].mxu1 }
 0x18d   : > { %v664_v37 = vadd.f32 %v2840_v38, %v663_v34  ;;  %v2029_v39 = vpop.f32.mrb[10].mxu0  ;;  %2070 = vmatprep.mubr.bf16.mxu1 %v809_v29  ;;  %v728_v40 = vadd.f32 %v2840_v38, %v727_v36  ;;  %v2045_v41 = vpop.f32.mrb[10].mxu1 }
 0x18e   : > { %v675_v42 = vadd.f32 %v2029_v39, %v2840_v38  ;;  %v666_v43 = vpop.f32.mrb[11].mxu0  ;;  %2071 = vmatmul.mubr.bf16.gmra.mrb[20].mxu1 %v810_v27  ;;  %v784_v44 = vmax.f32 %v736_v35, 0.0  ;;  %v739_v45 = vadd.f32 %v2045_v41, %v2840_v38  ;;  %v730_v46 = vpop.f32.mrb[11].mxu1  ;;  %v768_v50 = vmax.f32 %v672_v33, 0.0 }
 0x18f   : > { %v667_v47 = vadd.f32 %v2840_v38, %v666_v43  ;;  %v782_v48 = vmax.f32 %v728_v40, 0.0  ;;  %v731_v49 = vadd.f32 %v2840_v38, %v730_v46  ;;  %v766_v53 = vmax.f32 %v664_v37, 0.0 }
 0x190   : > { %v769_v51 = vmax.f32 %v675_v42, 0.0  ;;  %v785_v52 = vmax.f32 %v739_v45, 0.0 }
 0x191   : > { %v767_v54 = vmax.f32 %v667_v47, 0.0  ;;  %v783_v55 = vmax.f32 %v731_v49, 0.0 }
 0x192   : > { %v812_v56 = vpack.c.bf16 %v769_v51, %v768_v50  ;;  %v820_v57 = vpack.c.bf16 %v785_v52, %v784_v44 }
 0x193   : > { %v811_v58 = vpack.c.bf16 %v767_v54, %v766_v53  ;;  %v2032_v59 = vpop.f32.mrb[12].mxu0  ;;  %v819_v60 = vpack.c.bf16 %v783_v55, %v782_v48  ;;  %v2048_v61 = vpop.f32.mrb[12].mxu1 }
 0x194   : > { %v688_v62 = vadd.f32 %v2032_v59, %v2840_v38  ;;  %v679_v63 = vpop.f32.mrb[13].mxu0  ;;  %v752_v1 = vadd.f32 %v2048_v61, %v2840_v38  ;;  %v743_v2 = vpop.f32.mrb[13].mxu1 }
 0x195   : > { %v680_v4 = vadd.f32 %v2840_v38, %v679_v63  ;;  %v2033_v5 = vpop.f32.mrb[14].mxu0  ;;  %2074 = vmatprep.mubr.bf16.mxu1 %v811_v58  ;;  %v744_v6 = vadd.f32 %v2840_v38, %v743_v2  ;;  %v2049_v7 = vpop.f32.mrb[14].mxu1 }
 0x196   : > { %v691_v8 = vadd.f32 %v2033_v5, %v2840_v38  ;;  %v682_v9 = vpop.f32.mrb[15].mxu0  ;;  %2075 = vmatmul.mubr.bf16.gmra.mrb[24].mxu1 %v812_v56  ;;  %v788_v10 = vmax.f32 %v752_v1, 0.0  ;;  %v755_v11 = vadd.f32 %v2049_v7, %v2840_v38  ;;  %v746_v12 = vpop.f32.mrb[15].mxu1  ;;  %v772_v16 = vmax.f32 %v688_v62, 0.0 }
 0x197   : > { %v683_v13 = vadd.f32 %v2840_v38, %v682_v9  ;;  %v786_v14 = vmax.f32 %v744_v6, 0.0  ;;  %v747_v15 = vadd.f32 %v2840_v38, %v746_v12  ;;  %v770_v19 = vmax.f32 %v680_v4, 0.0  ;;  %v2281_v38 = vld [vmem:[#allocation8 + $0x30] sm:$0xff]  }
 0x198   : > { %v773_v17 = vmax.f32 %v691_v8, 0.0  ;;  %v789_v18 = vmax.f32 %v755_v11, 0.0  ;;  %2110 = vmatprep.subr.bf16.mxu0 %v2281_v38 }
 0x199   : > { %v771_v20 = vmax.f32 %v683_v13, 0.0  ;;  %v787_v21 = vmax.f32 %v747_v15, 0.0  ;;  %2111 = vmatpush3.bf16.msra.mxu0 %v2281_v38 }
 0x19a   : > { %v814_v22 = vpack.c.bf16 %v773_v17, %v772_v16  ;;  %v822_v23 = vpack.c.bf16 %v789_v18, %v788_v10  ;;  %2112 = vmatprep.subr.bf16.mxu0 %v2282_v26 }
 0x19b   : > { %v813_v24 = vpack.c.bf16 %v771_v20, %v770_v19  ;;  %v821_v25 = vpack.c.bf16 %v787_v21, %v786_v14 }
 0x19d   : > { %2078 = vmatprep.mubr.bf16.mxu1 %v813_v24  ;;  %2113 = vmatpush3.bf16.msra.mxu0 %v2282_v26 }
 0x19e   : > { %2079 = vmatmul.mubr.bf16.gmra.mrb[28].mxu1 %v814_v22 }
 0x19f   : > { %2082 = vmatprep.mubr.bf16.mxu1 %v2852_v3  ;;  %v2889_v3 = vld [vmem:[%s3111_s6] ss:$0 sm:$0xff] }
 0x1a6   : > { %2083 = vmatmul.mubr.bf16.gmra.mrb[32].mxu1 %v2850_v0 }
 0x1a7   : > { %2086 = vmatprep.mubr.bf16.mxu1 %v2864_v31 }
 0x1ae   : > { %2087 = vmatmul.mubr.bf16.gmra.mrb[36].mxu1 %v2862_v28 }
 0x1af   : > { %2090 = vmatprep.mubr.bf16.mxu1 %v819_v60 }
 0x1b6   : > { %2091 = vmatmul.mubr.bf16.gmra.mrb[40].mxu1 %v820_v57 }
 0x1b7   : > { %2094 = vmatprep.mubr.bf16.mxu1 %v821_v25 }
 0x1be   : > { %2095 = vmatmul.mubr.bf16.gmra.mrb[44].mxu1 %v822_v23 }
 0x259   : > { %v2068_v0 = vpop.f32.mrb[16].mxu1 }
 0x25a   : > { %v920_v27 = vadd.f32 %v2068_v0, %v2889_v3  ;;  %v911_v29 = vpop.f32.mrb[17].mxu1 }
 0x25b   : > { %v912_v28 = vadd.f32 %v2889_v3, %v911_v29  ;;  %v2069_v30 = vpop.f32.mrb[18].mxu1 }
 0x25c   : > { %v923_v31 = vadd.f32 %v2069_v30, %v2889_v3  ;;  %v914_v32 = vpop.f32.mrb[19].mxu1  ;;  %v1040_v34 = vmax.f32 %v920_v27, 0.0 }
 0x25d   : > { %v915_v33 = vadd.f32 %v2889_v3, %v914_v32  ;;  %v1038_v36 = vmax.f32 %v912_v28, 0.0 }
 0x25e   : > { %v1041_v35 = vmax.f32 %v923_v31, 0.0 }
 0x25f   : > { %v1039_v37 = vmax.f32 %v915_v33, 0.0 }
 0x260   : > { %v1088_v39 = vpack.c.bf16 %v1041_v35, %v1040_v34 }
 0x261   : > { %v1087_v40 = vpack.c.bf16 %v1039_v37, %v1038_v36  ;;  %v2072_v41 = vpop.f32.mrb[20].mxu1 }
 0x262   : > { %v936_v42 = vadd.f32 %v2072_v41, %v2889_v3  ;;  %v927_v43 = vpop.f32.mrb[21].mxu1 }
 0x263   : > { %v928_v44 = vadd.f32 %v2889_v3, %v927_v43  ;;  %v2073_v45 = vpop.f32.mrb[22].mxu1  ;;  %2114 = vmatprep.mubr.bf16.mxu0 %v1087_v40 }
 0x264   : > { %v939_v46 = vadd.f32 %v2073_v45, %v2889_v3  ;;  %v930_v47 = vpop.f32.mrb[23].mxu1  ;;  %2115 = vmatmul.mubr.bf16.vlgmr.msra.gmra.mrb[16].mxu0 %v1088_v39  ;;  %v1044_v49 = vmax.f32 %v936_v42, 0.0 }
 0x265   : > { %v931_v48 = vadd.f32 %v2889_v3, %v930_v47  ;;  %v1042_v51 = vmax.f32 %v928_v44, 0.0 }
 0x266   : > { %v1045_v50 = vmax.f32 %v939_v46, 0.0 }
 0x267   : > { %v1043_v52 = vmax.f32 %v931_v48, 0.0 }
 0x268   : > { %v1090_v53 = vpack.c.bf16 %v1045_v50, %v1044_v49 }
 0x269   : > { %v1089_v54 = vpack.c.bf16 %v1043_v52, %v1042_v51  ;;  %v2076_v55 = vpop.f32.mrb[24].mxu1 }
 0x26a   : > { %v952_v56 = vadd.f32 %v2076_v55, %v2889_v3  ;;  %v943_v57 = vpop.f32.mrb[25].mxu1 }
 0x26b   : > { %v944_v58 = vadd.f32 %v2889_v3, %v943_v57  ;;  %v2077_v59 = vpop.f32.mrb[26].mxu1  ;;  %2118 = vmatprep.mubr.bf16.mxu0 %v1089_v54 }
 0x26c   : > { %v955_v60 = vadd.f32 %v2077_v59, %v2889_v3  ;;  %v946_v61 = vpop.f32.mrb[27].mxu1  ;;  %2119 = vmatmul.mubr.bf16.gmra.mrb[20].mxu0 %v1090_v53  ;;  %v1048_v63 = vmax.f32 %v952_v56, 0.0 }
 0x26d   : > { %v947_v62 = vadd.f32 %v2889_v3, %v946_v61  ;;  %v1046_v2 = vmax.f32 %v944_v58, 0.0 }
 0x26e   : > { %v1049_v1 = vmax.f32 %v955_v60, 0.0 }
 0x26f   : > { %v1047_v4 = vmax.f32 %v947_v62, 0.0 }
 0x270   : > { %v1092_v5 = vpack.c.bf16 %v1049_v1, %v1048_v63 }
 0x271   : > { %v1091_v6 = vpack.c.bf16 %v1047_v4, %v1046_v2  ;;  %v2080_v7 = vpop.f32.mrb[28].mxu1 }
 0x272   : > { %v968_v8 = vadd.f32 %v2080_v7, %v2889_v3  ;;  %v959_v9 = vpop.f32.mrb[29].mxu1 }
 0x273   : > { %v960_v10 = vadd.f32 %v2889_v3, %v959_v9  ;;  %v2081_v11 = vpop.f32.mrb[30].mxu1  ;;  %2122 = vmatprep.mubr.bf16.mxu0 %v1091_v6 }
 0x274   : > { %v971_v12 = vadd.f32 %v2081_v11, %v2889_v3  ;;  %v962_v13 = vpop.f32.mrb[31].mxu1  ;;  %2123 = vmatmul.mubr.bf16.gmra.mrb[24].mxu0 %v1092_v5  ;;  %v1052_v15 = vmax.f32 %v968_v8, 0.0 }
 0x275   : > { %v963_v14 = vadd.f32 %v2889_v3, %v962_v13  ;;  %v1050_v17 = vmax.f32 %v960_v10, 0.0 }
 0x276   : > { %v1053_v16 = vmax.f32 %v971_v12, 0.0 }
 0x277   : > { %v1051_v18 = vmax.f32 %v963_v14, 0.0  ;;  %v2926_v14 = vld [vmem:[%s3113_s8] ss:$0 sm:$0xff] }
 0x278   : > { %v1094_v19 = vpack.c.bf16 %v1053_v16, %v1052_v15 }
 0x279   : > { %v1093_v20 = vpack.c.bf16 %v1051_v18, %v1050_v17  ;;  %v2084_v21 = vpop.f32.mrb[32].mxu1 }
 0x27a   : > { %v984_v22 = vadd.f32 %v2084_v21, %v2889_v3  ;;  %v975_v23 = vpop.f32.mrb[33].mxu1 }
 0x27b   : > { %v976_v24 = vadd.f32 %v2889_v3, %v975_v23  ;;  %v2085_v25 = vpop.f32.mrb[34].mxu1  ;;  %2126 = vmatprep.mubr.bf16.mxu0 %v1093_v20 }
 0x27c   : > { %v987_v38 = vadd.f32 %v2085_v25, %v2889_v3  ;;  %v978_v26 = vpop.f32.mrb[35].mxu1  ;;  %2127 = vmatmul.mubr.bf16.gmra.mrb[28].mxu0 %v1094_v19  ;;  %v1056_v27 = vmax.f32 %v984_v22, 0.0 }
 0x27d   : > { %v979_v0 = vadd.f32 %v2889_v3, %v978_v26  ;;  %v1054_v28 = vmax.f32 %v976_v24, 0.0  ;;  %v2937_v26 = vld [vmem:[%s3106_s1] ss:$0 sm:$0xff] }
 0x27e   : > { %v1057_v29 = vmax.f32 %v987_v38, 0.0 }
 0x27f   : > { %v1055_v30 = vmax.f32 %v979_v0, 0.0 }
 0x280   : > { %v1096_v31 = vpack.c.bf16 %v1057_v29, %v1056_v27 }
 0x281   : > { %v1095_v32 = vpack.c.bf16 %v1055_v30, %v1054_v28  ;;  %v2088_v33 = vpop.f32.mrb[36].mxu1 }
 0x282   : > { %v1000_v34 = vadd.f32 %v2088_v33, %v2889_v3  ;;  %v991_v35 = vpop.f32.mrb[37].mxu1  ;;  %v2945_v33 = vld [vmem:[%s3107_s2] ss:$0 sm:$0xff] }
 0x283   : > { %v992_v36 = vadd.f32 %v2889_v3, %v991_v35  ;;  %v2089_v37 = vpop.f32.mrb[38].mxu1  ;;  %2130 = vmatprep.mubr.bf16.mxu0 %v1095_v32 }
 0x284   : > { %v1003_v39 = vadd.f32 %v2089_v37, %v2889_v3  ;;  %v994_v40 = vpop.f32.mrb[39].mxu1  ;;  %2131 = vmatmul.mubr.bf16.gmra.mrb[32].mxu0 %v1096_v31  ;;  %v1060_v42 = vmax.f32 %v1000_v34, 0.0 }
 0x285   : > { %v995_v41 = vadd.f32 %v2889_v3, %v994_v40  ;;  %v1058_v44 = vmax.f32 %v992_v36, 0.0 }
 0x286   : > { %v1061_v43 = vmax.f32 %v1003_v39, 0.0 }
 0x287   : > { %v1059_v45 = vmax.f32 %v995_v41, 0.0 }
 0x288   : > { %v1098_v46 = vpack.c.bf16 %v1061_v43, %v1060_v42 }
 0x289   : > { %v1097_v47 = vpack.c.bf16 %v1059_v45, %v1058_v44  ;;  %v2092_v48 = vpop.f32.mrb[40].mxu1 }
 0x28a   : > { %v1016_v49 = vadd.f32 %v2092_v48, %v2889_v3  ;;  %v1007_v50 = vpop.f32.mrb[41].mxu1 }
 0x28b   : > { %v1008_v51 = vadd.f32 %v2889_v3, %v1007_v50  ;;  %v2093_v52 = vpop.f32.mrb[42].mxu1  ;;  %2134 = vmatprep.mubr.bf16.mxu0 %v1097_v47 }
 0x28c   : > { %v1019_v53 = vadd.f32 %v2093_v52, %v2889_v3  ;;  %v1010_v54 = vpop.f32.mrb[43].mxu1  ;;  %2135 = vmatmul.mubr.bf16.gmra.mrb[36].mxu0 %v1098_v46  ;;  %v1064_v56 = vmax.f32 %v1016_v49, 0.0 }
 0x28d   : > { %v1011_v55 = vadd.f32 %v2889_v3, %v1010_v54  ;;  %v1062_v58 = vmax.f32 %v1008_v51, 0.0 }
 0x28e   : > { %v1065_v57 = vmax.f32 %v1019_v53, 0.0 }
 0x28f   : > { %v1063_v59 = vmax.f32 %v1011_v55, 0.0 }
 0x290   : > { %v1100_v60 = vpack.c.bf16 %v1065_v57, %v1064_v56 }
 0x291   : > { %v1099_v61 = vpack.c.bf16 %v1063_v59, %v1062_v58  ;;  %v2096_v62 = vpop.f32.mrb[44].mxu1 }
 0x292   : > { %v1032_v63 = vadd.f32 %v2096_v62, %v2889_v3  ;;  %v1023_v1 = vpop.f32.mrb[45].mxu1 }
 0x293   : > { %v1024_v2 = vadd.f32 %v2889_v3, %v1023_v1  ;;  %v2097_v4 = vpop.f32.mrb[46].mxu1  ;;  %2138 = vmatprep.mubr.bf16.mxu0 %v1099_v61 }
 0x294   : > { %v1035_v5 = vadd.f32 %v2097_v4, %v2889_v3  ;;  %v1026_v6 = vpop.f32.mrb[47].mxu1  ;;  %2139 = vmatmul.mubr.bf16.gmra.mrb[40].mxu0 %v1100_v60  ;;  %v1068_v8 = vmax.f32 %v1032_v63, 0.0 }
 0x295   : > { %v1027_v7 = vadd.f32 %v2889_v3, %v1026_v6  ;;  %v1066_v10 = vmax.f32 %v1024_v2, 0.0 }
 0x296   : > { %v1069_v9 = vmax.f32 %v1035_v5, 0.0 }
 0x297   : > { %v1067_v11 = vmax.f32 %v1027_v7, 0.0 }
 0x298   : > { %v1102_v12 = vpack.c.bf16 %v1069_v9, %v1068_v8 }
 0x299   : > { %v1101_v13 = vpack.c.bf16 %v1067_v11, %v1066_v10 }
 0x29b   : > { %2142 = vmatprep.mubr.bf16.mxu0 %v1101_v13 }
 0x29c   : > { %2143 = vmatmul.mubr.bf16.gmra.mrb[44].mxu0 %v1102_v12 }
 0x337   : > { %v2116_v15 = vpop.f32.mrb[16].mxu0 }
 0x338   : > { %v1200_v16 = vadd.f32 %v2116_v15, %v2926_v14  ;;  %v1191_v17 = vpop.f32.mrb[17].mxu0 }
 0x339   : > { %v1192_v18 = vadd.f32 %v2926_v14, %v1191_v17  ;;  %v2117_v3 = vpop.f32.mrb[18].mxu0 }
 0x33a   : > { %2283 = vtanh.f32 %v1200_v16  ;;  %v1203_v19 = vadd.f32 %v2117_v3, %v2926_v14  ;;  %v1194_v20 = vpop.f32.mrb[19].mxu0 }
 0x33b   : > { %2285 = vtanh.f32 %v1192_v18  ;;  %v1195_v21 = vadd.f32 %v2926_v14, %v1194_v20 }
 0x33c   : > { %2287 = vtanh.f32 %v1203_v19 }
 0x33d   : > { %2289 = vtanh.f32 %v1195_v21 }
 0x33f   : > { %v2120_v22 = vpop.f32.mrb[20].mxu0 }
 0x340   : > { %v1216_v23 = vadd.f32 %v2120_v22, %v2926_v14  ;;  %v1207_v24 = vpop.f32.mrb[21].mxu0 }
 0x341   : > { %v1208_v25 = vadd.f32 %v2926_v14, %v1207_v24  ;;  %v2121_v38 = vpop.f32.mrb[22].mxu0 }
 0x342   : > { %2291 = vtanh.f32 %v1216_v23  ;;  %v1219_v0 = vadd.f32 %v2121_v38, %v2926_v14  ;;  %v1210_v27 = vpop.f32.mrb[23].mxu0 }
 0x343   : > { %2293 = vtanh.f32 %v1208_v25  ;;  %v1211_v29 = vadd.f32 %v2926_v14, %v1210_v27 }
 0x344   : > { %v2284_v28 = vpop.eup %2283  ;;  %2295 = vtanh.f32 %v1219_v0 }
 0x345   : > { %v2286_v30 = vpop.eup %2285  ;;  %v1359_v31 = vmul.f32 %v2284_v28, %v2937_v26  ;;  %2297 = vtanh.f32 %v1211_v29 }
 0x346   : > { %v2288_v32 = vpop.eup %2287  ;;  %v1357_v34 = vmul.f32 %v2286_v30, %v2937_v26 }
 0x347   : > { %v2290_v35 = vpop.eup %2289  ;;  %v1360_v36 = vmul.f32 %v2288_v32, %v2937_v26  ;;  %v2124_v37 = vpop.f32.mrb[24].mxu0  ;;  %v1398_v42 = vadd.f32 %v2945_v33, %v1359_v31 }
 0x348   : > { %v1358_v39 = vmul.f32 %v2290_v35, %v2937_v26  ;;  %v1232_v40 = vadd.f32 %v2124_v37, %v2926_v14  ;;  %v1223_v41 = vpop.f32.mrb[25].mxu0  ;;  %v1396_v46 = vadd.f32 %v2945_v33, %v1357_v34 }
 0x349   : > { %v1399_v43 = vadd.f32 %v2945_v33, %v1360_v36  ;;  %v1224_v44 = vadd.f32 %v2926_v14, %v1223_v41  ;;  %v2125_v45 = vpop.f32.mrb[26].mxu0 }
 0x34a   : > { %v1397_v47 = vadd.f32 %v2945_v33, %v1358_v39  ;;  %2299 = vtanh.f32 %v1232_v40  ;;  %v1235_v48 = vadd.f32 %v2125_v45, %v2926_v14  ;;  %v1226_v49 = vpop.f32.mrb[27].mxu0 }
 0x34b   : > { %v1843_v50 = vpack.c.bf16 %v1399_v43, %v1398_v42  ;;  %2301 = vtanh.f32 %v1224_v44  ;;  %v1227_v51 = vadd.f32 %v2926_v14, %v1226_v49 }
 0x34c   : > { %v2292_v52 = vpop.eup %2291  ;;  %v1838_v53 = vpack.c.bf16 %v1397_v47, %v1396_v46  ;;  %2303 = vtanh.f32 %v1235_v48 }
 0x34d   : > { %v2294_v54 = vpop.eup %2293  ;;  %1915 = vst [vmem:[%s2960_s21 + $0x8] sm:$0xff] %v1843_v50   ;;  %v1363_v55 = vmul.f32 %v2292_v52, %v2937_v26  ;;  %2305 = vtanh.f32 %v1227_v51 }
 0x34e   : > { %v2296_v56 = vpop.eup %2295  ;;  %1839 = vst [vmem:[%s2960_s21] sm:$0xff] %v1838_v53   ;;  %v1361_v57 = vmul.f32 %v2294_v54, %v2937_v26 }
 0x34f   : > { %v2298_v58 = vpop.eup %2297  ;;  %v1364_v59 = vmul.f32 %v2296_v56, %v2937_v26  ;;  %v2128_v60 = vpop.f32.mrb[28].mxu0  ;;  %v1402_v1 = vadd.f32 %v2945_v33, %v1363_v55 }
 0x350   : > { %v1362_v61 = vmul.f32 %v2298_v58, %v2937_v26  ;;  %v1248_v62 = vadd.f32 %v2128_v60, %v2926_v14  ;;  %v1239_v63 = vpop.f32.mrb[29].mxu0  ;;  %v1400_v6 = vadd.f32 %v2945_v33, %v1361_v57 }
 0x351   : > { %v1403_v2 = vadd.f32 %v2945_v33, %v1364_v59  ;;  %v1240_v4 = vadd.f32 %v2926_v14, %v1239_v63  ;;  %v2129_v5 = vpop.f32.mrb[30].mxu0 }
 0x352   : > { %v1401_v7 = vadd.f32 %v2945_v33, %v1362_v61  ;;  %2307 = vtanh.f32 %v1248_v62  ;;  %v1251_v8 = vadd.f32 %v2129_v5, %v2926_v14  ;;  %v1242_v9 = vpop.f32.mrb[31].mxu0 }
 0x353   : > { %v1853_v10 = vpack.c.bf16 %v1403_v2, %v1402_v1  ;;  %2309 = vtanh.f32 %v1240_v4  ;;  %v1243_v11 = vadd.f32 %v2926_v14, %v1242_v9 }
 0x354   : > { %v2300_v12 = vpop.eup %2299  ;;  %v1848_v13 = vpack.c.bf16 %v1401_v7, %v1400_v6  ;;  %2311 = vtanh.f32 %v1251_v8 }
 0x355   : > { %v2302_v15 = vpop.eup %2301  ;;  %1917 = vst [vmem:[%s2960_s21 + $0x18] sm:$0xff] %v1853_v10   ;;  %v1367_v16 = vmul.f32 %v2300_v12, %v2937_v26  ;;  %2313 = vtanh.f32 %v1243_v11 }
 0x356   : > { %v2304_v17 = vpop.eup %2303  ;;  %1916 = vst [vmem:[%s2960_s21 + $0x10] sm:$0xff] %v1848_v13   ;;  %v1365_v18 = vmul.f32 %v2302_v15, %v2937_v26 }
 0x357   : > { %v2306_v3 = vpop.eup %2305  ;;  %v1368_v19 = vmul.f32 %v2304_v17, %v2937_v26  ;;  %v2132_v20 = vpop.f32.mrb[32].mxu0  ;;  %v1406_v24 = vadd.f32 %v2945_v33, %v1367_v16 }
 0x358   : > { %v1366_v21 = vmul.f32 %v2306_v3, %v2937_v26  ;;  %v1264_v22 = vadd.f32 %v2132_v20, %v2926_v14  ;;  %v1255_v23 = vpop.f32.mrb[33].mxu0  ;;  %v1404_v27 = vadd.f32 %v2945_v33, %v1365_v18 }
 0x359   : > { %v1407_v25 = vadd.f32 %v2945_v33, %v1368_v19  ;;  %v1256_v38 = vadd.f32 %v2926_v14, %v1255_v23  ;;  %v2133_v0 = vpop.f32.mrb[34].mxu0 }
 0x35a   : > { %v1405_v29 = vadd.f32 %v2945_v33, %v1366_v21  ;;  %2315 = vtanh.f32 %v1264_v22  ;;  %v1267_v28 = vadd.f32 %v2133_v0, %v2926_v14  ;;  %v1258_v30 = vpop.f32.mrb[35].mxu0 }
 0x35b   : > { %v1863_v31 = vpack.c.bf16 %v1407_v25, %v1406_v24  ;;  %2317 = vtanh.f32 %v1256_v38  ;;  %v1259_v32 = vadd.f32 %v2926_v14, %v1258_v30 }
 0x35c   : > { %v2308_v34 = vpop.eup %2307  ;;  %v1858_v35 = vpack.c.bf16 %v1405_v29, %v1404_v27  ;;  %2319 = vtanh.f32 %v1267_v28 }
 0x35d   : > { %v2310_v36 = vpop.eup %2309  ;;  %1919 = vst [vmem:[%s2960_s21 + $0x28] sm:$0xff] %v1863_v31   ;;  %v1371_v37 = vmul.f32 %v2308_v34, %v2937_v26  ;;  %2321 = vtanh.f32 %v1259_v32 }
 0x35e   : > { %v2312_v39 = vpop.eup %2311  ;;  %1918 = vst [vmem:[%s2960_s21 + $0x20] sm:$0xff] %v1858_v35   ;;  %v1369_v40 = vmul.f32 %v2310_v36, %v2937_v26 }
 0x35f   : > { %v2314_v41 = vpop.eup %2313  ;;  %v1372_v42 = vmul.f32 %v2312_v39, %v2937_v26  ;;  %v2136_v43 = vpop.f32.mrb[36].mxu0  ;;  %v1410_v47 = vadd.f32 %v2945_v33, %v1371_v37 }
 0x360   : > { %v1370_v44 = vmul.f32 %v2314_v41, %v2937_v26  ;;  %v1280_v45 = vadd.f32 %v2136_v43, %v2926_v14  ;;  %v1271_v46 = vpop.f32.mrb[37].mxu0  ;;  %v1408_v51 = vadd.f32 %v2945_v33, %v1369_v40 }
 0x361   : > { %v1411_v48 = vadd.f32 %v2945_v33, %v1372_v42  ;;  %v1272_v49 = vadd.f32 %v2926_v14, %v1271_v46  ;;  %v2137_v50 = vpop.f32.mrb[38].mxu0 }
 0x362   : > { %v1409_v52 = vadd.f32 %v2945_v33, %v1370_v44  ;;  %2323 = vtanh.f32 %v1280_v45  ;;  %v1283_v53 = vadd.f32 %v2137_v50, %v2926_v14  ;;  %v1274_v54 = vpop.f32.mrb[39].mxu0 }
 0x363   : > { %v1873_v55 = vpack.c.bf16 %v1411_v48, %v1410_v47  ;;  %2325 = vtanh.f32 %v1272_v49  ;;  %v1275_v56 = vadd.f32 %v2926_v14, %v1274_v54 }
 0x364   : > { %v2316_v57 = vpop.eup %2315  ;;  %v1868_v58 = vpack.c.bf16 %v1409_v52, %v1408_v51  ;;  %2327 = vtanh.f32 %v1283_v53 }
 0x365   : > { %v2318_v59 = vpop.eup %2317  ;;  %1921 = vst [vmem:[%s2960_s21 + $0x38] sm:$0xff] %v1873_v55   ;;  %v1375_v60 = vmul.f32 %v2316_v57, %v2937_v26  ;;  %2329 = vtanh.f32 %v1275_v56 }
 0x366   : > { %v2320_v61 = vpop.eup %2319  ;;  %1920 = vst [vmem:[%s2960_s21 + $0x30] sm:$0xff] %v1868_v58   ;;  %v1373_v62 = vmul.f32 %v2318_v59, %v2937_v26 }
 0x367   : > { %v2322_v63 = vpop.eup %2321  ;;  %v1376_v1 = vmul.f32 %v2320_v61, %v2937_v26  ;;  %v2140_v2 = vpop.f32.mrb[40].mxu0  ;;  %v1414_v7 = vadd.f32 %v2945_v33, %v1375_v60 }
 0x368   : > { %v1374_v4 = vmul.f32 %v2322_v63, %v2937_v26  ;;  %v1296_v5 = vadd.f32 %v2140_v2, %v2926_v14  ;;  %v1287_v6 = vpop.f32.mrb[41].mxu0  ;;  %v1412_v11 = vadd.f32 %v2945_v33, %v1373_v62 }
 0x369   : > { %v1415_v8 = vadd.f32 %v2945_v33, %v1376_v1  ;;  %v1288_v9 = vadd.f32 %v2926_v14, %v1287_v6  ;;  %v2141_v10 = vpop.f32.mrb[42].mxu0 }
 0x36a   : > { %v1413_v12 = vadd.f32 %v2945_v33, %v1374_v4  ;;  %2331 = vtanh.f32 %v1296_v5  ;;  %v1299_v13 = vadd.f32 %v2141_v10, %v2926_v14  ;;  %v1290_v15 = vpop.f32.mrb[43].mxu0 }
 0x36b   : > { %v1883_v16 = vpack.c.bf16 %v1415_v8, %v1414_v7  ;;  %2333 = vtanh.f32 %v1288_v9  ;;  %v1291_v17 = vadd.f32 %v2926_v14, %v1290_v15 }
 0x36c   : > { %v2324_v18 = vpop.eup %2323  ;;  %v1878_v3 = vpack.c.bf16 %v1413_v12, %v1412_v11  ;;  %2335 = vtanh.f32 %v1299_v13 }
 0x36d   : > { %v2326_v19 = vpop.eup %2325  ;;  %1923 = vst [vmem:[%s2960_s21 + $0x48] sm:$0xff] %v1883_v16   ;;  %v1379_v20 = vmul.f32 %v2324_v18, %v2937_v26  ;;  %2337 = vtanh.f32 %v1291_v17 }
 0x36e   : > { %v2328_v21 = vpop.eup %2327  ;;  %1922 = vst [vmem:[%s2960_s21 + $0x40] sm:$0xff] %v1878_v3   ;;  %v1377_v22 = vmul.f32 %v2326_v19, %v2937_v26 }
 0x36f   : > { %v2330_v23 = vpop.eup %2329  ;;  %v1380_v24 = vmul.f32 %v2328_v21, %v2937_v26  ;;  %v2144_v25 = vpop.f32.mrb[44].mxu0  ;;  %v1418_v29 = vadd.f32 %v2945_v33, %v1379_v20 }
 0x370   : > { %v1378_v38 = vmul.f32 %v2330_v23, %v2937_v26  ;;  %v1312_v0 = vadd.f32 %v2144_v25, %v2926_v14  ;;  %v1303_v27 = vpop.f32.mrb[45].mxu0  ;;  %v1416_v32 = vadd.f32 %v2945_v33, %v1377_v22 }
 0x371   : > { %v1419_v28 = vadd.f32 %v2945_v33, %v1380_v24  ;;  %v1304_v30 = vadd.f32 %v2926_v14, %v1303_v27  ;;  %v2145_v31 = vpop.f32.mrb[46].mxu0 }
 0x372   : > { %v1417_v34 = vadd.f32 %v2945_v33, %v1378_v38  ;;  %2339 = vtanh.f32 %v1312_v0  ;;  %v1315_v35 = vadd.f32 %v2145_v31, %v2926_v14  ;;  %v1306_v36 = vpop.f32.mrb[47].mxu0 }
 0x373   : > { %v1893_v37 = vpack.c.bf16 %v1419_v28, %v1418_v29  ;;  %2341 = vtanh.f32 %v1304_v30  ;;  %v1307_v39 = vadd.f32 %v2926_v14, %v1306_v36 }
 0x374   : > { %v2332_v40 = vpop.eup %2331  ;;  %v1888_v41 = vpack.c.bf16 %v1417_v34, %v1416_v32  ;;  %2343 = vtanh.f32 %v1315_v35 }
 0x375   : > { %v2334_v42 = vpop.eup %2333  ;;  %1925 = vst [vmem:[%s2960_s21 + $0x58] sm:$0xff] %v1893_v37   ;;  %v1383_v43 = vmul.f32 %v2332_v40, %v2937_v26  ;;  %2345 = vtanh.f32 %v1307_v39 }
 0x376   : > { %v2336_v44 = vpop.eup %2335  ;;  %1924 = vst [vmem:[%s2960_s21 + $0x50] sm:$0xff] %v1888_v41   ;;  %v1381_v45 = vmul.f32 %v2334_v42, %v2937_v26 }
 0x377   : > { %v2338_v46 = vpop.eup %2337  ;;  %v1384_v47 = vmul.f32 %v2336_v44, %v2937_v26  ;;  %v1422_v14 = vadd.f32 %v2945_v33, %v1383_v43 }
 0x378   : > { %v1382_v48 = vmul.f32 %v2338_v46, %v2937_v26  ;;  %v1420_v50 = vadd.f32 %v2945_v33, %v1381_v45 }
 0x379   : > { %v1423_v49 = vadd.f32 %v2945_v33, %v1384_v47 }
 0x37a   : > { %v1421_v51 = vadd.f32 %v2945_v33, %v1382_v48 }
 0x37b   : > { %v1903_v52 = vpack.c.bf16 %v1423_v49, %v1422_v14 }
 0x37c   : > { %v2340_v53 = vpop.eup %2339  ;;  %v1898_v54 = vpack.c.bf16 %v1421_v51, %v1420_v50 }
 0x37d   : > { %v2342_v55 = vpop.eup %2341  ;;  %1927 = vst [vmem:[%s2960_s21 + $0x68] sm:$0xff] %v1903_v52   ;;  %v1387_v56 = vmul.f32 %v2340_v53, %v2937_v26 }
 0x37e   : > { %v2344_v57 = vpop.eup %2343  ;;  %1926 = vst [vmem:[%s2960_s21 + $0x60] sm:$0xff] %v1898_v54   ;;  %v1385_v58 = vmul.f32 %v2342_v55, %v2937_v26 }
 0x37f   : > { %v2346_v59 = vpop.eup %2345  ;;  %v1388_v60 = vmul.f32 %v2344_v57, %v2937_v26  ;;  %v1426_v62 = vadd.f32 %v2945_v33, %v1387_v56 }
 0x380   : > { %v1386_v61 = vmul.f32 %v2346_v59, %v2937_v26  ;;  %v1424_v1 = vadd.f32 %v2945_v33, %v1385_v58 }
 0x381   : > { %v1427_v63 = vadd.f32 %v2945_v33, %v1388_v60 }
 0x382   : > { %v1425_v2 = vadd.f32 %v2945_v33, %v1386_v61 }
 0x383   : > { %v1913_v4 = vpack.c.bf16 %v1427_v63, %v1426_v62 }
 0x384   : > { %v1908_v26 = vpack.c.bf16 %v1425_v2, %v1424_v1 }
 0x385   : > { %1929 = vst [vmem:[%s2960_s21 + $0x78] sm:$0xff] %v1913_v4  }
 0x386   : > { %1928 = vst [vmem:[%s2960_s21 + $0x70] sm:$0xff] %v1908_v26  }
 0x387   : > { %2474 = shalt.err (!%p2471_p4)
}
 0x388   : > { %s2475_s28 = scalar_lea.hbm %s3057_s25, 2048  ;;  %s2479_s21 = scalar_lea.hbm %s3138_s17, 4096 }
 0x389   : > { %p2476_p9 = scmp.ne.s32.totalorder %s3057_s25, %s2475_s28  ;;  %p2480_p8 = scmp.lt.u32.totalorder %s3057_s25, %s3138_s17 }
 0x38a   : > { %p2481_p13 = scmp.lt.u32.totalorder %s2479_s21, %s2475_s28  ;;  %p2483_p10 = scmp.lt.u32.totalorder %s2475_s28, %s3057_s25 }
 0x38b   : > { %p2477_p0 = pnand %p2476_p9, %p2750_p5 }
 0x38c   : > { %p2482_p6 = por %p2481_p13, %p2480_p8 }
 0x38d   : > { %p2478_p11 = pneg %p2477_p0 }
 0x38e   : > { %p2484_p3 = por %p2483_p10, %p2482_p6 }
 0x390   : > { %p2485_p7 = pnand %p2484_p3, %p2478_p11 }
 0x392   : > { %2488 = shalt.err (!%p2485_p7)
}
 0x393   : > { %s2544_s15 = smov 64   ;;  %s2545_s26 = smov 4  }
 0x394   : > { %2176 = dma.vmem_to_hbm [thread:$0]  (%p2750_p5), %s3059_s19, 2048, %s3057_s25, %s1589_s13, %s2544_s15, %s2544_s15, %s2545_s26  }
 0x395 PF: > { %s3139_s23 = sld [smem:[#allocation15_spill]]  ;;  %s3140_s22 = sld [smem:[#allocation16_spill]] }
 0x396   : > { %p3142_p1 = scmp.ge.s32.totalorder %s2535_s12, 2 }
 0x39b   : > { %s1617_s20 = sand.u32 1, %s3139_s23   ;;  %p3141_p12 = scmp.ne.s32.totalorder %s3140_s22, 0 }
 0x39c   : > { %s1618_s28 = scalar_lea.sflag [#allocation4], %s1617_s20 }
 0x39d   : > { %p2193_p2 = pnand %p3142_p1, %p3141_p12 }
 0x39f   : > { %2518 = dma.done.wait (!%p2193_p2), %s1618_s28, 2048  }
 0x3a0   : > { %2520 = vsyncadd (!%p2193_p2), %s1618_s28, 4294965248  ;;  %p24_p4 = scmp.ge.s32.totalorder %s2736_s14, 4   ;;  %s3143_s30 = smov %s2527_s10 }
 0x3a1   : > { %s3144_s10 = smov %s2531_s11  ;;  %s3145_s11 = smov %s2746_s16 }
 0x3a2   : > { %s3146_s12 = smov %s2736_s14  ;;  %26 = sbr.rel (!%p24_p4) target bundleno = 9 (0x9), region = 113 }
 0x3a9   :  { %1623 = vsyncpa [#allocation3], 1 }
 0x3aa   :  { %1625 = vsyncpa [#allocation3 + $0x1], 1 }
 0x3ab   :  { %1626 = vsyncpa [#allocation6], 1 }
 0x3ac   :  { %1627 = vsyncpa [#allocation9], 1 }
 0x3ad   :  { %1628 = vsyncpa [#allocation4], 1 }
 0x3ae   :  { %1630 = vsyncpa [#allocation4 + $0x1], 1 }

</bundles_post_ra>
